<compile_context>
chip_gen: v7x
topology: tpu7x:2x2x1
jax: 0.10.0
libtpu: 0.0.40
codegen_flags: <defaults>
</compile_context>

<pallas_src>
import math
from functools import partial

import numpy as np
import jax
import jax.numpy as jnp
from jax.experimental import pallas as pl
from jax.experimental.pallas import tpu as pltpu


# ----------------------------------------------------------------------------
# Hyper-parameters (mirrors hparams of the PyTorch module)
# ----------------------------------------------------------------------------
DATA_SHAPE = (4, 8, 8)          # (C, H, W) -> dims = 256
DIMS = int(np.prod(DATA_SHAPE))
NUM_HIDDEN = 128
T_EMB = 32                      # positional-encoding width (must be even)
NUM_LAYERS = 2
DATA_TIMESTEPS = 128            # max_len of PositionalEncoding (unused in fwd)
BATCH = 100

# Positional-encoding frequencies (hoisted; never rebuilt per forward call).
_DIV_HALF = np.exp(
    np.arange(0, T_EMB, 2, dtype=np.float32) * (-math.log(10000.0) / T_EMB)
).astype(np.float32)                                           # (T_EMB//2,)


def _round_up(n, m):
    return ((n + m - 1) // m) * m


def _num_tensorcores():
    """Best-effort TensorCore-per-chip count (v7x has 2, v5e/v6e have 1)."""
    try:
        dev = jax.devices()[0]
        nc = getattr(dev, "num_cores", None)
        if isinstance(nc, int) and nc > 0:
            return min(nc, 2)
        kind = str(getattr(dev, "device_kind", "")).lower()
        if "7" in kind:                      # "TPU v7x" / "TPU7x"
            return 2
    except Exception:
        pass
    return 1


# ----------------------------------------------------------------------------
# Pallas kernel: full forward pass for one tile of `tm` batch rows
# ----------------------------------------------------------------------------
def _ffnn_kernel(num_layers, dims, hidden,
                 x_ref, tfeat_ref, wx1_ref, wt1_ref, wsq_ref, b_ref, wout_ref,
                 o_ref):
    f32, bf16 = jnp.float32, jnp.bfloat16

    def mm(a, w):                               # bf16 MXU inputs, f32 accumulation
        return jnp.dot(a.astype(bf16), w, preferred_element_type=f32)

    biases = b_ref[...].astype(f32)             # (4 + L, H), tiny

    def b(i):
        return biases[i:i + 1, :]               # (1, H) -> broadcasts over rows

    x = x_ref[...]                              # (tm, dims) bf16 (f32 if dims==hidden)

    # ---------------- x_embedding: SkipLinear -> ReLU -> SkipLinear ---------
    h = mm(x, wx1_ref[...]) + b(0)
    if dims == hidden:                          # SkipLinear skips only when in == out
        h = x.astype(f32) + h
    h = jnp.maximum(h, 0.0)                     # ReLU
    x_emb = h + (mm(h, wsq_ref[0]) + b(1))      # hidden -> hidden: skip active

    # ---------------- t_to_hidden (sin/cos precomputed in the wrapper) ------
    ht = jnp.maximum(mm(tfeat_ref[...], wt1_ref[...]) + b(2), 0.0)  # Linear -> ReLU
    t_hidden = mm(ht, wsq_ref[1]) + b(3)                            # Linear (no skip)

    # ---------------- combine + residual MLP stack ---------------------------
    h = x_emb + t_hidden
    for l in range(num_layers):
        h = jnp.maximum(h + (mm(h, wsq_ref[2 + l]) + b(4 + l)), 0.0)  # SkipLinear+ReLU

    # final Linear(hidden -> dims, bias=False)
    o_ref[...] = mm(h, wout_ref[...]).astype(o_ref.dtype)


# ----------------------------------------------------------------------------
# Wrapper
# ----------------------------------------------------------------------------
def ffnn_time_dependent_forward(t, x, params, *, block_rows=512,
                                out_dtype=jnp.float32, num_tensorcores=None):
    """t: (B,1) or (B,) f32, x: (B,C,H,W) f32 -> (B,C,H,W) out_dtype."""
    B = x.shape[0]
    # x is only an MXU operand (DIMS != NUM_HIDDEN -> no x-residual), so stream bf16.
    x_dtype = jnp.bfloat16 if DIMS != NUM_HIDDEN else jnp.float32
    x_flat = x.reshape(B, DIMS).astype(x_dtype)
    t = jnp.asarray(t, jnp.float32).reshape(B, 1)

    # ---- chip-aware row tile ------------------------------------------------
    # v5e/v6e (1 TC): one grid step (per-step overhead dominates a sub-µs kernel).
    # v7x (2 TCs): >= 2 even steps so dimension_semantics=("parallel",) shards
    # the batch axis across both TensorCores.
    n_cores = _num_tensorcores() if num_tensorcores is None else max(1, num_tensorcores)
    B8 = _round_up(B, 8)
    tm = _round_up(pl.cdiv(B8, n_cores), 8)
    tm = max(8, min(tm, _round_up(block_rows, 8)))
    Bp = _round_up(B, tm)
    if Bp != B:
        x_flat = jnp.pad(x_flat, ((0, Bp - B), (0, 0)))
        t = jnp.pad(t, ((0, Bp - B), (0, 0)))
    grid = (Bp // tm,)

    # PositionalEncoding features (torch interleave: even lanes sin, odd cos),
    # computed once here -> no redundant transcendentals in the kernel.
    div = jnp.asarray(_DIV_HALF)                                  # (E//2,)
    s, c = jnp.sin(t * div), jnp.cos(t * div)                     # (Bp, E//2)
    t_feat = jnp.stack([s, c], axis=-1).reshape(Bp, T_EMB).astype(jnp.bfloat16)

    H, L, E = NUM_HIDDEN, NUM_LAYERS, T_EMB
    inputs = [x_flat, t_feat,
              params["wx1"], params["wt1"], params["wsq"],
              params["bias"], params["wout"]]

    row_spec = lambda i: (i, 0)
    const2 = lambda i: (0, 0)
    in_specs = [
        pl.BlockSpec((tm, DIMS), row_spec),                  # x rows (streamed, bf16)
        pl.BlockSpec((tm, E), row_spec),                     # t features (streamed)
        pl.BlockSpec((DIMS, H), const2),                     # wx1  (resident)
        pl.BlockSpec((E, H), const2),                        # wt1  (resident)
        pl.BlockSpec((2 + L, H, H), lambda i: (0, 0, 0)),    # packed square weights
        pl.BlockSpec((4 + L, H), const2),                    # packed biases
        pl.BlockSpec((H, DIMS), const2),                     # wout (resident)
    ]
    out_specs = pl.BlockSpec((tm, DIMS), row_spec)

    weight_bytes = 2 * (DIMS * H + E * H + (2 + L) * H * H + (4 + L) * H + H * DIMS)
    flops_per_row = 2 * (DIMS * H + E * H + (2 + L) * H * H + H * DIMS)
    out_bytes = Bp * DIMS * jnp.dtype(out_dtype).itemsize
    cost = pl.CostEstimate(
        flops=Bp * flops_per_row,
        transcendentals=0,                         # sin/cos now live in the wrapper
        bytes_accessed=weight_bytes + Bp * DIMS * 2 + Bp * E * 2 + out_bytes,
    )

    kernel = partial(_ffnn_kernel, NUM_LAYERS, DIMS, NUM_HIDDEN)
    out_flat = pl.pallas_call(
        kernel,
        out_shape=jax.ShapeDtypeStruct((Bp, DIMS), out_dtype),
        grid=grid,
        in_specs=in_specs,
        out_specs=out_specs,
        compiler_params=pltpu.CompilerParams(dimension_semantics=("parallel",)),
        cost_estimate=cost,
    )(*inputs)

    return out_flat[:B].reshape((B,) + DATA_SHAPE)


# ----------------------------------------------------------------------------
# Deterministic parameter construction (synthetic, not a checkpoint load).
# Packing / bf16 quantization happens HERE (once), not per call.
# ----------------------------------------------------------------------------
def init_params(key):
    def linear(key, fan_in, fan_out, bias=True):
        bound = 1.0 / math.sqrt(fan_in)
        kw, kb = jax.random.split(key)
        w = jax.random.uniform(kw, (fan_in, fan_out), jnp.float32, -bound, bound)
        b = (jax.random.uniform(kb, (1, fan_out), jnp.float32, -bound, bound)
             if bias else None)
        return w, b

    keys = jax.random.split(key, 5 + NUM_LAYERS)
    raw = {}
    raw["wx1"], raw["bx1"] = linear(keys[0], DIMS, NUM_HIDDEN)
    raw["wx2"], raw["bx2"] = linear(keys[1], NUM_HIDDEN, NUM_HIDDEN)
    raw["wt1"], raw["bt1"] = linear(keys[2], T_EMB, NUM_HIDDEN)
    raw["wt2"], raw["bt2"] = linear(keys[3], NUM_HIDDEN, NUM_HIDDEN)
    for l in range(NUM_LAYERS):
        raw[f"wl{l}"], raw[f"bl{l}"] = linear(keys[4 + l], NUM_HIDDEN, NUM_HIDDEN)
    raw["wout"], _ = linear(keys[4 + NUM_LAYERS], NUM_HIDDEN, DIMS, bias=False)

    bf16 = jnp.bfloat16
    q = {k: (v.astype(bf16) if v is not None else None) for k, v in raw.items()}

    # Pack the four (H,H) square weights and all six biases.
    wsq = jnp.stack([q["wx2"], q["wt2"]] + [q[f"wl{l}"] for l in range(NUM_LAYERS)],
                    axis=0)
    bias = jnp.concatenate(
        [q["bx1"], q["bx2"], q["bt1"], q["bt2"]]
        + [q[f"bl{l}"] for l in range(NUM_LAYERS)], axis=0)

    kernel_params = {"wx1": q["wx1"], "wt1": q["wt1"], "wsq": wsq,
                     "bias": bias, "wout": q["wout"]}
    return kernel_params, q, raw


# ----------------------------------------------------------------------------
# Pure-JAX reference (mirrors the PyTorch forward exactly) for validation.
# bf16_dots=True reproduces the kernel's mixed-precision math; bf16_dots=False
# with raw f32 weights is the module-faithful f32 reference.
# ----------------------------------------------------------------------------
def reference_forward(t, x, w, *, bf16_dots=False):
    B = x.shape[0]
    xf = x.reshape(B, DIMS).astype(jnp.float32)
    t = jnp.asarray(t, jnp.float32).reshape(B, 1)

    div = jnp.asarray(_DIV_HALF)
    s, c = jnp.sin(t * div), jnp.cos(t * div)                    # (B, E//2)
    t_feat = jnp.stack([s, c], axis=-1).reshape(B, T_EMB)        # interleave sin/cos

    def mm(a, wgt):
        if bf16_dots:
            a = a.astype(jnp.bfloat16)
        return jnp.dot(a, wgt, preferred_element_type=jnp.float32)

    def lin(h, wgt, b):
        y = mm(h, wgt)
        return y if b is None else y + b.astype(jnp.float32)

    # x_embedding: SkipLinear -> ReLU -> SkipLinear
    h = lin(xf, w["wx1"], w["bx1"])
    if DIMS == NUM_HIDDEN:
        h = xf + h
    h = jax.nn.relu(h)
    x_emb = h + lin(h, w["wx2"], w["bx2"])

    # t_to_hidden: Linear -> ReLU -> Linear
    ht = jax.nn.relu(lin(t_feat, w["wt1"], w["bt1"]))
    t_hid = lin(ht, w["wt2"], w["bt2"])

    h = x_emb + t_hid
    for l in range(NUM_LAYERS):
        h = jax.nn.relu(h + lin(h, w[f"wl{l}"], w[f"bl{l}"]))
    out = mm(h, w["wout"])
    return out.reshape((B,) + DATA_SHAPE)


# ----------------------------------------------------------------------------
if __name__ == "__main__":
    key = jax.random.PRNGKey(0)
    kp, kx, kt = jax.random.split(key, 3)

    kernel_params, qweights, raw_weights = init_params(kp)
    x = jax.random.normal(kx, (BATCH,) + DATA_SHAPE, dtype=jnp.float32)
    t = jax.random.uniform(kt, (BATCH, 1), dtype=jnp.float32)     # t in [0, 1)
    # TODO(synk): the torch PositionalEncoding also accepts integer timesteps up to
    # DATA_TIMESTEPS; this forward treats t as the continuous argument of sin/cos,
    # matching the module's forward() formula.

    out = ffnn_time_dependent_forward(t, x, kernel_params)
    out = jax.block_until_ready(out)
    assert out.shape == x.shape

    # 1) exact-mirror check: reference with the same bf16 weights / bf16 dot inputs
    ref_mirror = jax.block_until_ready(reference_forward(t, x, qweights, bf16_dots=True))
    np.testing.assert_allclose(np.asarray(out), np.asarray(ref_mirror),
                               rtol=2e-3, atol=2e-3)

    # 2) module-faithful f32 reference; looser tolerance covers bf16 weight storage
    ref_f32 = jax.block_until_ready(reference_forward(t, x, raw_weights, bf16_dots=False))
    np.testing.assert_allclose(np.asarray(out), np.asarray(ref_f32),
                               rtol=5e-2, atol=5e-2)

    # Exercise the multi-step (v7x-style) grid path on any chip as well.
    out2 = jax.block_until_ready(
        ffnn_time_dependent_forward(t, x, kernel_params, num_tensorcores=2))
    np.testing.assert_allclose(np.asarray(out2), np.asarray(ref_mirror),
                               rtol=2e-3, atol=2e-3)

    print("KERNEL_OK")
</pallas_src>

<mosaic_0001>
module attributes {stable_mosaic.version = 11 : i64} {
  func.func @_ffnn_kernel(%arg0: i32, %arg1: memref<104x256xbf16, #tpu.memory_space<vmem>>, %arg2: memref<104x32xbf16, #tpu.memory_space<vmem>>, %arg3: memref<256x128xbf16, #tpu.memory_space<vmem>>, %arg4: memref<32x128xbf16, #tpu.memory_space<vmem>>, %arg5: memref<4x128x128xbf16, #tpu.memory_space<vmem>>, %arg6: memref<6x128xbf16, #tpu.memory_space<vmem>>, %arg7: memref<128x256xbf16, #tpu.memory_space<vmem>>, %arg8: memref<104x256xf32, #tpu.memory_space<vmem>>) attributes {dimension_semantics = [#tpu.dimension_semantics<parallel>], iteration_bounds = array<i64: 1>, scalar_prefetch = 0 : i64, scratch_operands = 0 : i64, tpu.core_type = #tpu.core_type<tc>, window_params = [{transform_indices = @transform_0, window_bounds = array<i64: 104, 256>}, {transform_indices = @transform_1, window_bounds = array<i64: 104, 32>}, {pipeline_mode = #tpu.pipeline_mode<synchronous>, transform_indices = @transform_2, window_bounds = array<i64: 256, 128>}, {pipeline_mode = #tpu.pipeline_mode<synchronous>, transform_indices = @transform_3, window_bounds = array<i64: 32, 128>}, {pipeline_mode = #tpu.pipeline_mode<synchronous>, transform_indices = @transform_4, window_bounds = array<i64: 4, 128, 128>}, {pipeline_mode = #tpu.pipeline_mode<synchronous>, transform_indices = @transform_5, window_bounds = array<i64: 6, 128>}, {pipeline_mode = #tpu.pipeline_mode<synchronous>, transform_indices = @transform_6, window_bounds = array<i64: 128, 256>}, {transform_indices = @transform_7, window_bounds = array<i64: 104, 256>}]} {
    %c0 = arith.constant 0 : index
    %c0_0 = arith.constant 0 : index
    %0 = vector.load %arg6[%c0, %c0_0] : memref<6x128xbf16, #tpu.memory_space<vmem>>, vector<6x128xbf16>
    %1 = arith.extf %0 : vector<6x128xbf16> to vector<6x128xf32>
    %c0_1 = arith.constant 0 : index
    %c0_2 = arith.constant 0 : index
    %2 = vector.load %arg1[%c0_1, %c0_2] : memref<104x256xbf16, #tpu.memory_space<vmem>>, vector<104x256xbf16>
    %c0_3 = arith.constant 0 : index
    %c0_4 = arith.constant 0 : index
    %3 = vector.load %arg3[%c0_3, %c0_4] : memref<256x128xbf16, #tpu.memory_space<vmem>>, vector<256x128xbf16>
    %cst = arith.constant dense<0.000000e+00> : vector<104x128xf32>
    %4 = tpu.matmul %2, %3, %cst {dimension_numbers = #tpu.dot_dimension_numbers<[1], [0], [0], [1], [0, 0, 1, 1], [], []>} : vector<104x256xbf16>, vector<256x128xbf16>, vector<104x128xf32> -> vector<104x128xf32>
    %5 = vector.extract_strided_slice %1 {offsets = [0, 0], sizes = [1, 128], strides = [1, 1]} : vector<6x128xf32> to vector<1x128xf32>
    %6 = vector.broadcast %5 : vector<1x128xf32> to vector<104x128xf32>
    %7 = arith.addf %4, %6 : vector<104x128xf32>
    %cst_5 = arith.constant 0.000000e+00 : f32
    %8 = vector.broadcast %cst_5 : f32 to vector<104x128xf32>
    %9 = arith.maximumf %7, %8 : vector<104x128xf32>
    %c0_6 = arith.constant 0 : index
    %c0_7 = arith.constant 0 : index
    %c0_8 = arith.constant 0 : index
    %10 = vector.load %arg5[%c0_6, %c0_7, %c0_8] : memref<4x128x128xbf16, #tpu.memory_space<vmem>>, vector<1x128x128xbf16>
    %11 = vector.shape_cast %10 : vector<1x128x128xbf16> to vector<128x128xbf16>
    %12 = arith.truncf %9 : vector<104x128xf32> to vector<104x128xbf16>
    %cst_9 = arith.constant dense<0.000000e+00> : vector<104x128xf32>
    %13 = tpu.matmul %12, %11, %cst_9 {dimension_numbers = #tpu.dot_dimension_numbers<[1], [0], [0], [1], [0, 0, 1, 1], [], []>} : vector<104x128xbf16>, vector<128x128xbf16>, vector<104x128xf32> -> vector<104x128xf32>
    %14 = vector.extract_strided_slice %1 {offsets = [1, 0], sizes = [1, 128], strides = [1, 1]} : vector<6x128xf32> to vector<1x128xf32>
    %15 = vector.broadcast %14 : vector<1x128xf32> to vector<104x128xf32>
    %16 = arith.addf %13, %15 : vector<104x128xf32>
    %17 = arith.addf %9, %16 : vector<104x128xf32>
    %c0_10 = arith.constant 0 : index
    %c0_11 = arith.constant 0 : index
    %18 = vector.load %arg2[%c0_10, %c0_11] : memref<104x32xbf16, #tpu.memory_space<vmem>>, vector<104x32xbf16>
    %c0_12 = arith.constant 0 : index
    %c0_13 = arith.constant 0 : index
    %19 = vector.load %arg4[%c0_12, %c0_13] : memref<32x128xbf16, #tpu.memory_space<vmem>>, vector<32x128xbf16>
    %cst_14 = arith.constant dense<0.000000e+00> : vector<104x128xf32>
    %20 = tpu.matmul %18, %19, %cst_14 {dimension_numbers = #tpu.dot_dimension_numbers<[1], [0], [0], [1], [0, 0, 1, 1], [], []>} : vector<104x32xbf16>, vector<32x128xbf16>, vector<104x128xf32> -> vector<104x128xf32>
    %21 = vector.extract_strided_slice %1 {offsets = [2, 0], sizes = [1, 128], strides = [1, 1]} : vector<6x128xf32> to vector<1x128xf32>
    %22 = vector.broadcast %21 : vector<1x128xf32> to vector<104x128xf32>
    %23 = arith.addf %20, %22 : vector<104x128xf32>
    %cst_15 = arith.constant 0.000000e+00 : f32
    %24 = vector.broadcast %cst_15 : f32 to vector<104x128xf32>
    %25 = arith.maximumf %23, %24 : vector<104x128xf32>
    %c1 = arith.constant 1 : index
    %c0_16 = arith.constant 0 : index
    %c0_17 = arith.constant 0 : index
    %26 = vector.load %arg5[%c1, %c0_16, %c0_17] : memref<4x128x128xbf16, #tpu.memory_space<vmem>>, vector<1x128x128xbf16>
    %27 = vector.shape_cast %26 : vector<1x128x128xbf16> to vector<128x128xbf16>
    %28 = arith.truncf %25 : vector<104x128xf32> to vector<104x128xbf16>
    %cst_18 = arith.constant dense<0.000000e+00> : vector<104x128xf32>
    %29 = tpu.matmul %28, %27, %cst_18 {dimension_numbers = #tpu.dot_dimension_numbers<[1], [0], [0], [1], [0, 0, 1, 1], [], []>} : vector<104x128xbf16>, vector<128x128xbf16>, vector<104x128xf32> -> vector<104x128xf32>
    %30 = vector.extract_strided_slice %1 {offsets = [3, 0], sizes = [1, 128], strides = [1, 1]} : vector<6x128xf32> to vector<1x128xf32>
    %31 = vector.broadcast %30 : vector<1x128xf32> to vector<104x128xf32>
    %32 = arith.addf %29, %31 : vector<104x128xf32>
    %33 = arith.addf %17, %32 : vector<104x128xf32>
    %c2 = arith.constant 2 : index
    %c0_19 = arith.constant 0 : index
    %c0_20 = arith.constant 0 : index
    %34 = vector.load %arg5[%c2, %c0_19, %c0_20] : memref<4x128x128xbf16, #tpu.memory_space<vmem>>, vector<1x128x128xbf16>
    %35 = vector.shape_cast %34 : vector<1x128x128xbf16> to vector<128x128xbf16>
    %36 = arith.truncf %33 : vector<104x128xf32> to vector<104x128xbf16>
    %cst_21 = arith.constant dense<0.000000e+00> : vector<104x128xf32>
    %37 = tpu.matmul %36, %35, %cst_21 {dimension_numbers = #tpu.dot_dimension_numbers<[1], [0], [0], [1], [0, 0, 1, 1], [], []>} : vector<104x128xbf16>, vector<128x128xbf16>, vector<104x128xf32> -> vector<104x128xf32>
    %38 = vector.extract_strided_slice %1 {offsets = [4, 0], sizes = [1, 128], strides = [1, 1]} : vector<6x128xf32> to vector<1x128xf32>
    %39 = vector.broadcast %38 : vector<1x128xf32> to vector<104x128xf32>
    %40 = arith.addf %37, %39 : vector<104x128xf32>
    %41 = arith.addf %33, %40 : vector<104x128xf32>
    %cst_22 = arith.constant 0.000000e+00 : f32
    %42 = vector.broadcast %cst_22 : f32 to vector<104x128xf32>
    %43 = arith.maximumf %41, %42 : vector<104x128xf32>
    %c3 = arith.constant 3 : index
    %c0_23 = arith.constant 0 : index
    %c0_24 = arith.constant 0 : index
    %44 = vector.load %arg5[%c3, %c0_23, %c0_24] : memref<4x128x128xbf16, #tpu.memory_space<vmem>>, vector<1x128x128xbf16>
    %45 = vector.shape_cast %44 : vector<1x128x128xbf16> to vector<128x128xbf16>
    %46 = arith.truncf %43 : vector<104x128xf32> to vector<104x128xbf16>
    %cst_25 = arith.constant dense<0.000000e+00> : vector<104x128xf32>
    %47 = tpu.matmul %46, %45, %cst_25 {dimension_numbers = #tpu.dot_dimension_numbers<[1], [0], [0], [1], [0, 0, 1, 1], [], []>} : vector<104x128xbf16>, vector<128x128xbf16>, vector<104x128xf32> -> vector<104x128xf32>
    %48 = vector.extract_strided_slice %1 {offsets = [5, 0], sizes = [1, 128], strides = [1, 1]} : vector<6x128xf32> to vector<1x128xf32>
    %49 = vector.broadcast %48 : vector<1x128xf32> to vector<104x128xf32>
    %50 = arith.addf %47, %49 : vector<104x128xf32>
    %51 = arith.addf %43, %50 : vector<104x128xf32>
    %cst_26 = arith.constant 0.000000e+00 : f32
    %52 = vector.broadcast %cst_26 : f32 to vector<104x128xf32>
    %53 = arith.maximumf %51, %52 : vector<104x128xf32>
    %c0_27 = arith.constant 0 : index
    %c0_28 = arith.constant 0 : index
    %54 = vector.load %arg7[%c0_27, %c0_28] : memref<128x256xbf16, #tpu.memory_space<vmem>>, vector<128x256xbf16>
    %55 = arith.truncf %53 : vector<104x128xf32> to vector<104x128xbf16>
    %cst_29 = arith.constant dense<0.000000e+00> : vector<104x256xf32>
    %56 = tpu.matmul %55, %54, %cst_29 {dimension_numbers = #tpu.dot_dimension_numbers<[1], [0], [0], [1], [0, 0, 1, 1], [], []>} : vector<104x128xbf16>, vector<128x256xbf16>, vector<104x256xf32> -> vector<104x256xf32>
    %c0_30 = arith.constant 0 : index
    %c0_31 = arith.constant 0 : index
    %57 = vector.load %arg8[%c0_30, %c0_31] : memref<104x256xf32, #tpu.memory_space<vmem>>, vector<104x256xf32>
    tpu.vector_store %arg8[%c0_30, %c0_31], %56 {strides = array<i32>} : memref<104x256xf32, #tpu.memory_space<vmem>>, vector<104x256xf32>,
    return
  }
  func.func @transform_0(%arg0: i32) -> (i32, i32) {
    %c0_i32 = arith.constant 0 : i32
    %c0_i32_0 = arith.constant 0 : i32
    return %arg0, %c0_i32 : i32, i32
  }
  func.func @transform_1(%arg0: i32) -> (i32, i32) {
    %c0_i32 = arith.constant 0 : i32
    %c0_i32_0 = arith.constant 0 : i32
    return %arg0, %c0_i32 : i32, i32
  }
  func.func @transform_2(%arg0: i32) -> (i32, i32) {
    %c0_i32 = arith.constant 0 : i32
    %c0_i32_0 = arith.constant 0 : i32
    %c0_i32_1 = arith.constant 0 : i32
    return %c0_i32, %c0_i32_0 : i32, i32
  }
  func.func @transform_3(%arg0: i32) -> (i32, i32) {
    %c0_i32 = arith.constant 0 : i32
    %c0_i32_0 = arith.constant 0 : i32
    %c0_i32_1 = arith.constant 0 : i32
    return %c0_i32, %c0_i32_0 : i32, i32
  }
  func.func @transform_4(%arg0: i32) -> (i32, i32, i32) {
    %c0_i32 = arith.constant 0 : i32
    %c0_i32_0 = arith.constant 0 : i32
    %c0_i32_1 = arith.constant 0 : i32
    %c0_i32_2 = arith.constant 0 : i32
    return %c0_i32, %c0_i32_0, %c0_i32_1 : i32, i32, i32
  }
  func.func @transform_5(%arg0: i32) -> (i32, i32) {
    %c0_i32 = arith.constant 0 : i32
    %c0_i32_0 = arith.constant 0 : i32
    %c0_i32_1 = arith.constant 0 : i32
    return %c0_i32, %c0_i32_0 : i32, i32
  }
  func.func @transform_6(%arg0: i32) -> (i32, i32) {
    %c0_i32 = arith.constant 0 : i32
    %c0_i32_0 = arith.constant 0 : i32
    %c0_i32_1 = arith.constant 0 : i32
    return %c0_i32, %c0_i32_0 : i32, i32
  }
  func.func @transform_7(%arg0: i32) -> (i32, i32) {
    %c0_i32 = arith.constant 0 : i32
    %c0_i32_0 = arith.constant 0 : i32
    return %arg0, %c0_i32 : i32, i32
  }
}

</mosaic_0001>

<bundles_post_ra>
// kernel: tpu_custom_call.1
= control target key start
LH: loop header
LB: loop body
LE: loop exit
PB: predicated region body
PF: predicated region fallthrough
CT: control target
= control target key end

     0   :  { %12 = vsyncpa [#allocation3], 0  ;;  %s2912_s0 = inlined_call_operand.hbm [shape: bf16[104,256], index: 0, kind: input, shape index: {}]   ;;  %s2913_s1 = inlined_call_operand.vmem [shape: bf16[104,32], index: 1, kind: input, shape index: {}]   ;;  %s2914_s2 = inlined_call_operand.hbm [shape: bf16[256,128], index: 2, kind: input, shape index: {}]   ;;  %s2915_s3 = inlined_call_operand.vmem [shape: bf16[32,128], index: 3, kind: input, shape index: {}]   ;;  %s2916_s4 = inlined_call_operand.hbm [shape: bf16[4,128,128], index: 4, kind: input, shape index: {}]   ;;  %s2917_s5 = inlined_call_operand.vmem [shape: bf16[6,128], index: 5, kind: input, shape index: {}]   ;;  %s2918_s6 = inlined_call_operand.hbm [shape: bf16[128,256], index: 6, kind: input, shape index: {}]   ;;  %s2919_s7 = inlined_call_operand.hbm [shape: f32[104,256], index: 7, kind: output, shape index: {}]  }
   0x1   :  { %13 = vsyncpa [#allocation6], 0 }
   0x2   :  { %14 = vsyncpa [#allocation9], 0 }
   0x3   :  { %15 = vsyncpa [#allocation4], 0  ;;  %s2302_s24 = smov [#allocation5]   ;;  %s2184_s28 = scalar_lea.hbm %s2914_s2, 2048 }
   0x4   :  { %s35_s25 = sshll.u32 %s2302_s24, 4  ;;  %p2185_p0 = scmp.ne.s32.totalorder %s2914_s2, %s2184_s28  ;;  %s36_s25 = int_to_ptr.vmem [resolvable:$true] %s35_s25 }
   0x5   :  { %p2188_p1 = scmp.lt.u32.totalorder %s2184_s28, %s2914_s2 }
   0x7   :  { %p2190_p2 = pnand %p2188_p1, %p2185_p0 }
   0x9   :  { %2193 = shalt.err (!%p2190_p2)
}
   0xa   :  { %s2194_s10 = scalar_lea.vmem %s36_s25, 2048  ;;  %p2199_p4 = scmp.lt.s32.totalorder %s36_s25, %s36_s25 }
   0xb   :  { %p2195_p3 = scmp.ne.s32.totalorder %s36_s25, %s2194_s10  ;;  %p2200_p5 = scmp.lt.s32.totalorder %s2194_s10, %s2194_s10 }
   0xd   :  { %p2201_p6 = por %p2200_p5, %p2199_p4 }
   0xf   :  { %p2202_p7 = pnand %p2201_p6, %p2195_p3 }
  0x11   :  { %2205 = shalt.err (!%p2202_p7)
}
  0x12   :  { %s2303_s11 = smov 64   ;;  %s2304_s12 = smov 4  }
  0x13   :  { %41 = dma.hbm_to_vmem [thread:$0]  %s2914_s2, 2048, %s36_s25, [#allocation6], %s2303_s11, %s2303_s11, %s2304_s12  }
  0x14   :  { %s2305_s15 = smov [#allocation2]   ;;  %s2206_s19 = scalar_lea.hbm %s2912_s0, 1664 }
  0x15   :  { %s21_s16 = sshll.u32 %s2305_s15, 4  ;;  %p2207_p8 = scmp.ne.s32.totalorder %s2912_s0, %s2206_s19  ;;  %s22_s16 = int_to_ptr.vmem [resolvable:$true] %s21_s16 }
  0x16   :  { %p2210_p9 = scmp.lt.u32.totalorder %s2206_s19, %s2912_s0 }
  0x18   :  { %p2212_p10 = pnand %p2210_p9, %p2207_p8 }
  0x1a   :  { %2215 = shalt.err (!%p2212_p10)
}
  0x1b   :  { %s2216_s24 = scalar_lea.vmem %s22_s16, 1664  ;;  %p2221_p12 = scmp.lt.s32.totalorder %s22_s16, %s22_s16 }
  0x1c   :  { %p2217_p11 = scmp.ne.s32.totalorder %s22_s16, %s2216_s24  ;;  %p2222_p13 = scmp.lt.s32.totalorder %s2216_s24, %s2216_s24 }
  0x1e   :  { %p2223_p0 = por %p2222_p13, %p2221_p12 }
  0x20   :  { %p2224_p1 = pnand %p2223_p0, %p2217_p11 }
  0x22   :  { %2227 = shalt.err (!%p2224_p1)
}
  0x23   :  { %s2306_s2 = smov 128   ;;  %s2307_s25 = smov 8  }
  0x24   :  { %27 = dma.hbm_to_vmem [thread:$0]  %s2912_s0, 1664, %s22_s16, [#allocation3], %s2306_s2, %s2306_s2, %s2307_s25  }
  0x25   :  { %s2308_s28 = smov [#allocation7]   ;;  %s2309_s30 = smov [#allocation8]  }
  0x26   :  { %s49_s29 = sshll.u32 %s2308_s28, 4  ;;  %s63_s8 = sshll.u32 %s2309_s30, 4  ;;  %s50_s29 = int_to_ptr.vmem [resolvable:$true] %s49_s29  ;;  %s2386_s8 = int_to_ptr.vmem [resolvable:$true] %s63_s8 }
  0x27   :  { %s2228_s13 = scalar_lea.hbm %s2916_s4, 4096 }
  0x28   :  { %p2229_p2 = scmp.ne.s32.totalorder %s2916_s4, %s2228_s13  ;;  %p2232_p3 = scmp.lt.u32.totalorder %s2228_s13, %s2916_s4 }
  0x2a   :  { %p2234_p4 = pnand %p2232_p3, %p2229_p2 }
  0x2c   :  { %2237 = shalt.err (!%p2234_p4)
}
  0x2d   :  { %s2238_s0 = scalar_lea.vmem %s50_s29, 4096  ;;  %p2243_p6 = scmp.lt.s32.totalorder %s50_s29, %s50_s29 }
  0x2e   :  { %p2239_p5 = scmp.ne.s32.totalorder %s50_s29, %s2238_s0  ;;  %p2244_p7 = scmp.lt.s32.totalorder %s2238_s0, %s2238_s0 }
  0x30   :  { %p2245_p8 = por %p2244_p7, %p2243_p6 }
  0x32   :  { %p2246_p9 = pnand %p2245_p8, %p2239_p5 }
  0x34   :  { %2249 = shalt.err (!%p2246_p9)
}
  0x35   :  { %55 = dma.hbm_to_vmem [thread:$0]  %s2916_s4, 4096, %s50_s29, [#allocation6], %s2303_s11, %s2303_s11, %s2304_s12  }
  0x36   :  { %s2250_s22 = scalar_lea.hbm %s2918_s6, 2048 }
  0x37   :  { %p2251_p10 = scmp.ne.s32.totalorder %s2918_s6, %s2250_s22  ;;  %p2254_p11 = scmp.lt.u32.totalorder %s2250_s22, %s2918_s6 }
  0x39   :  { %p2256_p12 = pnand %p2254_p11, %p2251_p10 }
  0x3b   :  { %2259 = shalt.err (!%p2256_p12)
}
  0x3c   :  { %s2260_s28 = scalar_lea.vmem %s2386_s8, 2048  ;;  %p2265_p0 = scmp.lt.s32.totalorder %s2386_s8, %s2386_s8 }
  0x3d   :  { %p2261_p13 = scmp.ne.s32.totalorder %s2386_s8, %s2260_s28  ;;  %p2266_p1 = scmp.lt.s32.totalorder %s2260_s28, %s2260_s28 }
  0x3f   :  { %p2267_p2 = por %p2266_p1, %p2265_p0 }
  0x41   :  { %p2268_p3 = pnand %p2267_p2, %p2261_p13 }
  0x43   :  { %2271 = shalt.err (!%p2268_p3)
}
  0x44   :  { %69 = dma.hbm_to_vmem [thread:$0]  %s2918_s6, 2048, %s2386_s8, [#allocation9], %s2306_s2, %s2306_s2, %s2307_s25  }
  0x45   :  { %2294 = dma.done.wait [#allocation3], 1664  }
  0x46   :  { %2295 = vsyncadd [#allocation3], 4294965632 }
  0x47   :  { %2296 = dma.done.wait [#allocation6], 6144  }
  0x48   :  { %2297 = vsyncadd [#allocation6], 4294961152 }
  0x49   :  { %2298 = dma.done.wait [#allocation9], 2048  }
  0x4a   :  { %2299 = vsyncadd [#allocation9], 4294965248  ;;  %v2310_v0 = vmov 0.0   ;;  %vm2311_vm0 = vmmov 0   ;;  %v2083_v1 = vld [vmem:[#allocation5 + $0x40] sm:$0xff]   ;;  %v2085_v3 = vld [vmem:[#allocation5 + $0x48] sm:$0xff]   ;;  %v130_v46 = vlaneseq }
  0x4b   :  { %1790 = vmatprep.subr.bf16.mxu1 %v2310_v0  ;;  %1806 = vmatprep.mubr.msk.bf16.mxu1 %vm2311_vm0, %v2310_v0  ;;  %v2084_v2 = vld [vmem:[#allocation5] sm:$0xff]   ;;  %v2086_v4 = vld [vmem:[#allocation5 + $0x8] sm:$0xff]   ;;  %v2087_v5 = vld [vmem:[#allocation5 + $0x50] sm:$0xff]   ;;  %vm640_vm1 = vcmask 261120  }
  0x4c   :  { %1663 = vmatprep.subr.bf16.mxu0 %v2083_v1  ;;  %v2088_v6 = vld [vmem:[#allocation5 + $0x10] sm:$0xff]   ;;  %v2089_v7 = vld [vmem:[#allocation5 + $0x58] sm:$0xff]   ;;  %v2091_v9 = vld [vmem:[#allocation5 + $0x60] sm:$0xff]   ;;  %v2475_v47 = vshrl.u32 %v130_v46, 7 }
  0x4d   :  { %1664 = vmatpush3.bf16.msra.mxu0 %v2084_v2  ;;  %v2090_v8 = vld [vmem:[#allocation5 + $0x18] sm:$0xff]   ;;  %v2092_v10 = vld [vmem:[#allocation5 + $0x20] sm:$0xff]   ;;  %v2093_v11 = vld [vmem:[#allocation5 + $0x68] sm:$0xff]  }
  0x4e   :  { %1665 = vmatprep.subr.bf16.mxu0 %v2085_v3  ;;  %v2101_v12 = vld [vmem:[#allocation2 + $0x4] ss:$8 sps:$4 sm:$0xff]   ;;  %v2094_v13 = vld [vmem:[#allocation5 + $0x28] sm:$0xff]   ;;  %v2095_v14 = vld [vmem:[#allocation5 + $0x70] sm:$0xff]   ;;  %v132_v50 = vsub.s32 0, %v2475_v47 }
  0x4f   :  { %329 = vmatprep.mubr.bf16.mxu0 %v2101_v12  ;;  %v2096_v15 = vld [vmem:[#allocation5 + $0x30] sm:$0xff]   ;;  %v2097_v16 = vld [vmem:[#allocation5 + $0x78] sm:$0xff]   ;;  %v2125_v21 = vld [vmem:[#allocation7] sm:$0xff]  }
  0x50   :  { %v2098_v17 = vld [vmem:[#allocation5 + $0x38] sm:$0xff]   ;;  %v2102_v19 = vld [vmem:[#allocation2 + $0x14] ss:$8 sps:$4 sm:$0xff]   ;;  %1791 = vmatpush3.bf16.msra.mxu1 %v2125_v21  ;;  %v2435_v23 = vld [vmem:[%s2915_s3 + $0x8] sm:$0xff]  }
  0x51   :  { %1666 = vmatpush3.bf16.msra.mxu0 %v2086_v4  ;;  %v2099_v18 = vld [vmem:[#allocation2] ss:$8 sps:$4 sm:$0xff]   ;;  %v2126_v22 = vld [vmem:[#allocation7 + $0x8] sm:$0xff]   ;;  %1792 = vmatprep.subr.bf16.mxu1 %v2310_v0  ;;  %v2127_v24 = vld [vmem:[#allocation7 + $0x10] sm:$0xff]  }
  0x52   :  { %1667 = vmatprep.subr.bf16.mxu0 %v2087_v5  ;;  %v2429_v20 = vld [vmem:[%s2915_s3] sm:$0xff]   ;;  %v2104_v25 = vld [vmem:[#allocation2 + $0x10] ss:$8 sps:$4 sm:$0xff]   ;;  %v2129_v28 = vld [vmem:[#allocation7 + $0x20] sm:$0xff]  }
  0x53   :  { %v2105_v26 = vld [vmem:[#allocation2 + $0x24] ss:$8 sps:$4 sm:$0xff]   ;;  %v2107_v29 = vld [vmem:[#allocation2 + $0x20] ss:$8 sps:$4 sm:$0xff]   ;;  %v2108_v30 = vld [vmem:[#allocation2 + $0x34] ss:$8 sps:$4 sm:$0xff]  }
  0x54   :  { %1793 = vmatpush3.bf16.msra.mxu1 %v2126_v22  ;;  %v2128_v27 = vld [vmem:[#allocation7 + $0x18] sm:$0xff]   ;;  %v2110_v31 = vld [vmem:[#allocation2 + $0x30] ss:$8 sps:$4 sm:$0xff]   ;;  %v2114_v34 = vld [vmem:[#allocation2 + $0x54] ss:$8 sps:$4 sm:$0xff]  }
  0x55   :  { %1668 = vmatpush3.bf16.msra.mxu0 %v2088_v6  ;;  %1794 = vmatprep.subr.bf16.mxu1 %v2310_v0  ;;  %v2111_v32 = vld [vmem:[#allocation2 + $0x44] ss:$8 sps:$4 sm:$0xff]   ;;  %v2113_v33 = vld [vmem:[#allocation2 + $0x40] ss:$8 sps:$4 sm:$0xff]   ;;  %v2116_v36 = vld [vmem:[#allocation2 + $0x50] ss:$8 sps:$4 sm:$0xff]  }
  0x56   :  { %1669 = vmatprep.subr.bf16.mxu0 %v2089_v7  ;;  %v97_v35 = vld [vmem:[#allocation2 + $0x60] sm:$0xff]  ;;  %v2122_v40 = vld [vmem:[%s2913_s1 + $0x8] sm:$0xff]   ;;  %v2123_v41 = vld [vmem:[%s2913_s1 + $0x10] sm:$0xff]  }
  0x57   :  { %v1582_v37 = vcombine.high %v97_v35, %v97_v35  ;;  %v1581_v38 = vcombine.low %v97_v35, %v97_v35  ;;  %v2121_v39 = vld [vmem:[%s2913_s1] sm:$0xff]   ;;  %v2124_v42 = vld [vmem:[%s2913_s1 + $0x18] sm:$0xff]   ;;  %v2130_v43 = vld [vmem:[#allocation7 + $0x28] sm:$0xff]  }
  0x58   :  { %1795 = vmatpush3.bf16.msra.mxu1 %v2127_v24  ;;  %v2131_v44 = vld [vmem:[#allocation7 + $0x30] sm:$0xff]   ;;  %v2132_v45 = vld [vmem:[#allocation7 + $0x38] sm:$0xff]  }
  0x59   :  { %1670 = vmatpush3.bf16.msra.mxu0 %v2090_v8  ;;  %1796 = vmatprep.subr.bf16.mxu1 %v2310_v0  ;;  %v83_v48 = vld [vmem:[%s2917_s5] sm:$0x7] }
  0x5a   :  { %1671 = vmatprep.subr.bf16.mxu0 %v2091_v9  ;;  %v2480_v49 = vunpack.c.l.bf16 %v83_v48 }
  0x5c   :  { %1797 = vmatpush3.bf16.msra.mxu1 %v2128_v27  ;;  %v2484_v52 = vrot.slane %v2480_v49, %v132_v50 }
  0x5d   :  { %1672 = vmatpush3.bf16.msra.mxu0 %v2092_v10  ;;  %1798 = vmatprep.subr.bf16.mxu1 %v2310_v0 }
  0x5e   :  { %1673 = vmatprep.subr.bf16.mxu0 %v2093_v11 }
  0x60   :  { %1799 = vmatpush3.bf16.msra.mxu1 %v2129_v28 }
  0x61   :  { %1674 = vmatpush3.bf16.msra.mxu0 %v2094_v13  ;;  %1800 = vmatprep.subr.bf16.mxu1 %v2310_v0 }
  0x62   :  { %1675 = vmatprep.subr.bf16.mxu0 %v2095_v14 }
  0x64   :  { %1801 = vmatpush3.bf16.msra.mxu1 %v2130_v43 }
  0x65   :  { %1676 = vmatpush3.bf16.msra.mxu0 %v2096_v15  ;;  %1802 = vmatprep.subr.bf16.mxu1 %v2310_v0 }
  0x66   :  { %1677 = vmatprep.subr.bf16.mxu0 %v2097_v16 }
  0x68   :  { %1803 = vmatpush3.bf16.msra.mxu1 %v2131_v44 }
  0x69   :  { %1678 = vmatpush3.bf16.msra.mxu0 %v2098_v17  ;;  %1804 = vmatprep.subr.bf16.mxu1 %v2310_v0 }
  0x6a   :  { %1834 = vmatprep.subr.bf16.mxu0 %v2310_v0 }
  0x6c   :  { %330 = vmatmul.mubr.bf16.vlgmr.msra.gmra.mrb[0].mxu0 %v2099_v18  ;;  %1805 = vmatpush3.bf16.msra.mxu1 %v2132_v45 }
  0x6d   :  { %337 = vmatprep.mubr.bf16.mxu0 %v2102_v19  ;;  %1835 = vmatpush3.bf16.msra.mxu0 %v2429_v20 }
  0x6e   :  { %1836 = vmatprep.subr.bf16.mxu0 %v2310_v0  ;;  %1998 = vmatprep.subr.bf16.mxu1 %v2310_v0 }
  0x71   :  { %1837 = vmatpush3.bf16.msra.mxu0 %v2435_v23 }
  0x72   :  { %1910 = vmatprep.subr.bf16.mxu0 %v2310_v0 }
  0x74   :  { %338 = vmatmul.mubr.bf16.gmra.mrb[4].mxu0 %v2104_v25 }
  0x75   :  { %345 = vmatprep.mubr.bf16.mxu0 %v2105_v26 }
  0x7c   :  { %346 = vmatmul.mubr.bf16.gmra.mrb[8].mxu0 %v2107_v29 }
  0x7d   :  { %353 = vmatprep.mubr.bf16.mxu0 %v2108_v30 }
  0x84   :  { %354 = vmatmul.mubr.bf16.gmra.mrb[12].mxu0 %v2110_v31 }
  0x85   :  { %361 = vmatprep.mubr.bf16.mxu0 %v2111_v32 }
  0x8c   :  { %362 = vmatmul.mubr.bf16.gmra.mrb[16].mxu0 %v2113_v33 }
  0x8d   :  { %369 = vmatprep.mubr.bf16.mxu0 %v2114_v34 }
  0x94   :  { %370 = vmatmul.mubr.bf16.gmra.mrb[20].mxu0 %v2116_v36 }
  0x95   :  { %377 = vmatprep.mubr.bf16.mxu0 %v1582_v37  ;;  %v423_v37 = vsub.s32 1, %v2475_v47 }
  0x97   :  { %v2551_v44 = vrot.slane %v2480_v49, %v423_v37 }
  0x9c   :  { %378 = vmatmul.mubr.bf16.gmra.mrb[24].mxu0 %v1581_v38 }
  0x9d   :  { %1838 = vmatprep.mubr.msk.bf16.mxu0 %vm2311_vm0, %v2310_v0 }
  0xa4   :  { %1839 = vmatmul.mubr.msk.bf16.vlgmr.msra.gmra.mrb[28].mxu0 %vm640_vm1, %v2121_v39 }
  0xa5   :  { %1842 = vmatprep.mubr.msk.bf16.mxu0 %vm2311_vm0, %v2310_v0 }
  0xac   :  { %1843 = vmatmul.mubr.msk.bf16.gmra.mrb[32].mxu0 %vm640_vm1, %v2122_v40 }
  0xad   :  { %1846 = vmatprep.mubr.msk.bf16.mxu0 %vm2311_vm0, %v2310_v0 }
  0xb4   :  { %1847 = vmatmul.mubr.msk.bf16.gmra.mrb[36].mxu0 %vm640_vm1, %v2123_v41  ;;  %v789_v41 = vsub.s32 3, %v2475_v47 }
  0xb5   :  { %1850 = vmatprep.mubr.msk.bf16.mxu0 %vm2311_vm0, %v2310_v0 }
  0xb6   :  { %v2554_v48 = vrot.slane %v2480_v49, %v789_v41 }
  0xbc   :  { %1851 = vmatmul.mubr.msk.bf16.gmra.mrb[40].mxu0 %vm640_vm1, %v2124_v42 }
  0xbd   :  { %1926 = vmatprep.mubr.msk.bf16.mxu0 %vm2311_vm0, %v2310_v0 }
 0x13f   :  { %v1679_v51 = vpop.f32.mrb[0].mxu0 }
 0x140   :  { %v1680_v53 = vpop.f32.mrb[1].mxu0 }
 0x141   :  { %v1681_v54 = vadd.f32 %v1680_v53, %v1679_v51  ;;  %v1682_v55 = vpop.f32.mrb[2].mxu0 }
 0x142   :  { %v1683_v56 = vpop.f32.mrb[3].mxu0 }
 0x143   :  { %v2487_v57 = vadd.f32 %v1681_v54, %v2484_v52  ;;  %v1684_v58 = vadd.f32 %v1683_v56, %v1682_v55 }
 0x145   :  { %v2490_v59 = vadd.f32 %v1684_v58, %v2484_v52  ;;  %v385_v60 = vmax.f32 %v2487_v57, 0.0 }
 0x147   :  { %v386_v61 = vmax.f32 %v2490_v59, 0.0  ;;  %v1685_v62 = vpop.f32.mrb[4].mxu0 }
 0x148   :  { %v1686_v63 = vpop.f32.mrb[5].mxu0 }
 0x149   :  { %v1687_v1 = vadd.f32 %v1686_v63, %v1685_v62  ;;  %v1688_v2 = vpop.f32.mrb[6].mxu0  ;;  %v414_v3 = vpack.c.bf16 %v386_v61, %v385_v60 }
 0x14a   :  { %v1689_v4 = vpop.f32.mrb[7].mxu0 }
 0x14b   :  { %v2499_v5 = vadd.f32 %v1687_v1, %v2484_v52  ;;  %v1690_v6 = vadd.f32 %v1689_v4, %v1688_v2  ;;  %1807 = vmatmul.mubr.bf16.vlgmr.msra.gmra.mrb[0].mxu1 %v414_v3 }
 0x14c   :  { %2000 = vmatpush3.bf16.msra.mxu1 %v2429_v20  ;;  %1810 = vmatprep.mubr.msk.bf16.mxu1 %vm2311_vm0, %v2310_v0 }
 0x14d   :  { %v2505_v7 = vadd.f32 %v1690_v6, %v2484_v52  ;;  %1999 = vmatprep.subr.bf16.mxu1 %v2310_v0  ;;  %v387_v8 = vmax.f32 %v2499_v5, 0.0 }
 0x14f   :  { %v388_v9 = vmax.f32 %v2505_v7, 0.0  ;;  %v1691_v10 = vpop.f32.mrb[8].mxu0  ;;  %v2008_v57 = vadd.f32 %v2551_v44, %v387_v8 }
 0x150   :  { %v1692_v11 = vpop.f32.mrb[9].mxu0  ;;  %2001 = vmatpush3.bf16.msra.mxu1 %v2435_v23 }
 0x151   :  { %v1693_v12 = vadd.f32 %v1692_v11, %v1691_v10  ;;  %v1694_v13 = vpop.f32.mrb[10].mxu0  ;;  %v415_v14 = vpack.c.bf16 %v388_v9, %v387_v8  ;;  %1866 = vmatprep.subr.bf16.mxu1 %v2310_v0 }
 0x152   :  { %v1695_v15 = vpop.f32.mrb[11].mxu0 }
 0x153   :  { %v2517_v16 = vadd.f32 %v1693_v12, %v2484_v52  ;;  %v1696_v17 = vadd.f32 %v1695_v15, %v1694_v13  ;;  %1811 = vmatmul.mubr.bf16.gmra.mrb[4].mxu1 %v415_v14  ;;  %v593_v13 = vsub.s32 2, %v2475_v47 }
 0x154   :  { %1814 = vmatprep.mubr.msk.bf16.mxu1 %vm2311_vm0, %v2310_v0 }
 0x155   :  { %v2522_v18 = vadd.f32 %v1696_v17, %v2484_v52  ;;  %v389_v19 = vmax.f32 %v2517_v16, 0.0 }
 0x157   :  { %v390_v20 = vmax.f32 %v2522_v18, 0.0  ;;  %v1697_v21 = vpop.f32.mrb[12].mxu0  ;;  %v2014_v7 = vadd.f32 %v2551_v44, %v389_v19 }
 0x158   :  { %v1698_v22 = vpop.f32.mrb[13].mxu0 }
 0x159   :  { %v1699_v23 = vadd.f32 %v1698_v22, %v1697_v21  ;;  %v1700_v24 = vpop.f32.mrb[14].mxu0  ;;  %v416_v25 = vpack.c.bf16 %v390_v20, %v389_v19 }
 0x15a   :  { %v1701_v26 = vpop.f32.mrb[15].mxu0 }
 0x15b   :  { %v2531_v27 = vadd.f32 %v1699_v23, %v2484_v52  ;;  %v1702_v28 = vadd.f32 %v1701_v26, %v1700_v24  ;;  %1815 = vmatmul.mubr.bf16.gmra.mrb[8].mxu1 %v416_v25  ;;  %v2581_v26 = vrot.slane %v2480_v49, %v593_v13 }
 0x15c   :  { %1818 = vmatprep.mubr.msk.bf16.mxu1 %vm2311_vm0, %v2310_v0 }
 0x15d   :  { %v2536_v29 = vadd.f32 %v1702_v28, %v2484_v52  ;;  %v391_v30 = vmax.f32 %v2531_v27, 0.0 }
 0x15f   :  { %v392_v31 = vmax.f32 %v2536_v29, 0.0  ;;  %v1703_v32 = vpop.f32.mrb[16].mxu0  ;;  %v2020_v18 = vadd.f32 %v2551_v44, %v391_v30 }
 0x160   :  { %v1704_v33 = vpop.f32.mrb[17].mxu0 }
 0x161   :  { %v1705_v34 = vadd.f32 %v1704_v33, %v1703_v32  ;;  %v1706_v35 = vpop.f32.mrb[18].mxu0  ;;  %v417_v36 = vpack.c.bf16 %v392_v31, %v391_v30 }
 0x162   :  { %v1707_v38 = vpop.f32.mrb[19].mxu0 }
 0x163   :  { %v364_v39 = vadd.f32 %v1705_v34, %v2484_v52  ;;  %v1708_v40 = vadd.f32 %v1707_v38, %v1706_v35  ;;  %1819 = vmatmul.mubr.bf16.gmra.mrb[12].mxu1 %v417_v36 }
 0x164   :  { %1822 = vmatprep.mubr.msk.bf16.mxu1 %vm2311_vm0, %v2310_v0 }
 0x165   :  { %v393_v42 = vmax.f32 %v364_v39, 0.0  ;;  %v367_v43 = vadd.f32 %v1708_v40, %v2484_v52 }
 0x167   :  { %v394_v45 = vmax.f32 %v367_v43, 0.0  ;;  %v1709_v46 = vpop.f32.mrb[20].mxu0  ;;  %v2026_v50 = vadd.f32 %v2551_v44, %v393_v42  ;;  %v2133_v43 = vld [vmem:[%s2913_s1 + $0x20] sm:$0xff]  }
 0x168   :  { %v1710_v51 = vpop.f32.mrb[21].mxu0 }
 0x169   :  { %v1711_v53 = vadd.f32 %v1710_v51, %v1709_v46  ;;  %v1712_v54 = vpop.f32.mrb[22].mxu0  ;;  %v418_v55 = vpack.c.bf16 %v394_v45, %v393_v42  ;;  %v2558_v56 = vadd.f32 %v2026_v50, %v2554_v48  ;;  %v2029_v58 = vadd.f32 %v2551_v44, %v394_v45  ;;  %v2134_v46 = vld [vmem:[#allocation7 + $0x40] sm:$0xff]  }
 0x16a   :  { %v1713_v62 = vpop.f32.mrb[23].mxu0 }
 0x16b   :  { %v372_v63 = vadd.f32 %v1711_v53, %v2484_v52  ;;  %v1714_v1 = vadd.f32 %v1713_v62, %v1712_v54  ;;  %1823 = vmatmul.mubr.bf16.gmra.mrb[16].mxu1 %v418_v55  ;;  %v2563_v2 = vadd.f32 %v2029_v58, %v2554_v48  ;;  %v2135_v62 = vld [vmem:[#allocation7 + $0x48] sm:$0xff]  }
 0x16c   :  { %1826 = vmatprep.mubr.msk.bf16.mxu1 %vm2311_vm0, %v2310_v0 }
 0x16d   :  { %v395_v3 = vmax.f32 %v372_v63, 0.0  ;;  %v375_v4 = vadd.f32 %v1714_v1, %v2484_v52 }
 0x16f   :  { %v396_v6 = vmax.f32 %v375_v4, 0.0  ;;  %v1715_v10 = vpop.f32.mrb[24].mxu0  ;;  %v2032_v11 = vadd.f32 %v2551_v44, %v395_v3 }
 0x170   :  { %v1716_v12 = vpop.f32.mrb[25].mxu0 }
 0x171   :  { %v1717_v14 = vadd.f32 %v1716_v12, %v1715_v10  ;;  %v1718_v15 = vpop.f32.mrb[26].mxu0  ;;  %v419_v17 = vpack.c.bf16 %v396_v6, %v395_v3  ;;  %v2571_v21 = vadd.f32 %v2032_v11, %v2554_v48  ;;  %v2035_v22 = vadd.f32 %v2551_v44, %v396_v6  ;;  %v2136_v3 = vld [vmem:[%s2913_s1 + $0x28] sm:$0xff]   ;;  %v2137_v6 = vld [vmem:[#allocation7 + $0x50] sm:$0xff]  }
 0x172   :  { %v1719_v23 = vpop.f32.mrb[27].mxu0 }
 0x173   :  { %v380_v24 = vadd.f32 %v1717_v14, %v2484_v52  ;;  %1827 = vmatmul.mubr.bf16.gmra.mrb[20].mxu1 %v419_v17  ;;  %v2576_v25 = vadd.f32 %v2035_v22, %v2554_v48  ;;  %v2138_v17 = vld [vmem:[#allocation7 + $0x58] sm:$0xff]  }
 0x174   :  { %1830 = vmatprep.mubr.msk.bf16.mxu1 %vm2311_vm0, %v2310_v0 }
 0x175   :  { %v397_v28 = vmax.f32 %v380_v24, 0.0  ;;  %v2140_v24 = vld [vmem:[%s2913_s1 + $0x30] ss:$0 sps:$4 sm:$0xff]   ;;  %s2313_s1 = smov [#allocation10]  }
 0x176   :  { %s1555_s21 = sshll.u32 %s2313_s1, 4  ;;  %s1556_s21 = int_to_ptr.vmem [resolvable:$true] %s1555_s21 }
 0x177   :  { %v420_v32 = vpack.c.bf16 %v397_v28, %v397_v28  ;;  %v696_v33 = vpop.f32.mrb[28].mxu0  ;;  %v2038_v34 = vadd.f32 %v2551_v44, %v397_v28  ;;  %s2272_s22 = scalar_lea.vmem %s1556_s21, 3328  ;;  %p2277_p5 = scmp.lt.s32.totalorder %s1556_s21, %s1556_s21 }
 0x178   :  { %v697_v35 = vadd.f32 %v696_v33, %v2581_v26  ;;  %v1840_v36 = vpop.f32.mrb[29].mxu0  ;;  %p2273_p4 = scmp.ne.s32.totalorder %s1556_s21, %s2272_s22  ;;  %p2278_p6 = scmp.lt.s32.totalorder %s2272_s22, %s2272_s22 }
 0x179   :  { %v699_v37 = vpop.f32.mrb[30].mxu0  ;;  %v2586_v52 = vadd.f32 %v2038_v34, %v2554_v48 }
 0x17a   :  { %v750_v38 = vmax.f32 %v697_v35, 0.0  ;;  %v700_v39 = vadd.f32 %v699_v37, %v2581_v26  ;;  %v1841_v40 = vpop.f32.mrb[31].mxu0  ;;  %p2279_p7 = por %p2278_p6, %p2277_p5 }
 0x17b   :  { %1831 = vmatmul.mubr.bf16.gmra.mrb[24].mxu1 %v420_v32  ;;  %v2139_v32 = vld [vmem:[#allocation7 + $0x60] sm:$0xff]  }
 0x17c   :  { %1854 = vmatprep.mubr.msk.bf16.mxu1 %vm2311_vm0, %v2310_v0  ;;  %v751_v41 = vmax.f32 %v700_v39, 0.0  ;;  %v2141_v39 = vld [vmem:[#allocation7 + $0x68] sm:$0xff]   ;;  %p2280_p8 = pnand %p2279_p7, %p2273_p4 }
 0x17e   :  { %v780_v42 = vpack.c.bf16 %v751_v41, %v750_v38 }
 0x17f   :  { %v704_v45 = vpop.f32.mrb[32].mxu0 }
 0x180   :  { %v705_v50 = vadd.f32 %v704_v45, %v2581_v26  ;;  %v1844_v51 = vpop.f32.mrb[33].mxu0  ;;  %v2143_v45 = vld [vmem:[#allocation7 + $0x78] sm:$0xff]  }
 0x181   :  { %v707_v53 = vpop.f32.mrb[34].mxu0  ;;  %v2147_v51 = vld [vmem:[#allocation7 + $0x98] sm:$0xff]  }
 0x182   :  { %v752_v54 = vmax.f32 %v705_v50, 0.0  ;;  %v708_v55 = vadd.f32 %v707_v53, %v2581_v26  ;;  %v1845_v58 = vpop.f32.mrb[35].mxu0  ;;  %v2146_v50 = vld [vmem:[#allocation7 + $0x90] sm:$0xff]   ;;  %v2148_v53 = vld [vmem:[#allocation7 + $0xa0] sm:$0xff]  }
 0x183   :  { %1855 = vmatmul.mubr.msk.bf16.vlgmr.msra.gmra.mrb[28].mxu1 %vm640_vm1, %v2133_v43  ;;  %v2142_v43 = vld [vmem:[#allocation7 + $0x70] sm:$0xff]   ;;  %v2151_v58 = vld [vmem:[#allocation7 + $0xb8] sm:$0xff]  }
 0x184   :  { %1867 = vmatpush3.bf16.msra.mxu1 %v2134_v46  ;;  %1858 = vmatprep.mubr.msk.bf16.mxu1 %vm2311_vm0, %v2310_v0  ;;  %v753_v63 = vmax.f32 %v708_v55, 0.0  ;;  %v2144_v46 = vld [vmem:[#allocation7 + $0x80] sm:$0xff]   ;;  %v2150_v55 = vld [vmem:[#allocation7 + $0xb0] sm:$0xff]  }
 0x185   :  { %1868 = vmatprep.subr.bf16.mxu1 %v2310_v0  ;;  %1911 = vmatpush3.bf16.msra.mxu0 %v2144_v46 }
 0x186   :  { %v781_v1 = vpack.c.bf16 %v753_v63, %v752_v54  ;;  %1912 = vmatprep.subr.bf16.mxu0 %v2310_v0  ;;  %v2149_v54 = vld [vmem:[#allocation7 + $0xa8] sm:$0xff]  }
 0x187   :  { %v712_v4 = vpop.f32.mrb[36].mxu0 }
 0x188   :  { %1869 = vmatpush3.bf16.msra.mxu1 %v2135_v62  ;;  %v713_v10 = vadd.f32 %v712_v4, %v2581_v26  ;;  %v1848_v11 = vpop.f32.mrb[37].mxu0 }
 0x189   :  { %1870 = vmatprep.subr.bf16.mxu1 %v2310_v0  ;;  %v715_v12 = vpop.f32.mrb[38].mxu0 }
 0x18a   :  { %v754_v13 = vmax.f32 %v713_v10, 0.0  ;;  %v716_v14 = vadd.f32 %v715_v12, %v2581_v26  ;;  %v1849_v15 = vpop.f32.mrb[39].mxu0 }
 0x18b   :  { %1859 = vmatmul.mubr.msk.bf16.gmra.mrb[32].mxu1 %vm640_vm1, %v2136_v3 }
 0x18c   :  { %1871 = vmatpush3.bf16.msra.mxu1 %v2137_v6  ;;  %1862 = vmatprep.mubr.msk.bf16.mxu1 %vm2311_vm0, %v2310_v0  ;;  %v755_v22 = vmax.f32 %v716_v14, 0.0 }
 0x18d   :  { %1872 = vmatprep.subr.bf16.mxu1 %v2310_v0 }
 0x18e   :  { %v782_v23 = vpack.c.bf16 %v755_v22, %v754_v13 }
 0x18f   :  { %v720_v28 = vpop.f32.mrb[40].mxu0 }
 0x190   :  { %1873 = vmatpush3.bf16.msra.mxu1 %v2138_v17  ;;  %v721_v33 = vadd.f32 %v720_v28, %v2581_v26  ;;  %v1852_v34 = vpop.f32.mrb[41].mxu0 }
 0x191   :  { %1874 = vmatprep.subr.bf16.mxu1 %v2310_v0  ;;  %v723_v35 = vpop.f32.mrb[42].mxu0 }
 0x192   :  { %v756_v36 = vmax.f32 %v721_v33, 0.0  ;;  %v724_v37 = vadd.f32 %v723_v35, %v2581_v26  ;;  %v1853_v38 = vpop.f32.mrb[43].mxu0 }
 0x193   :  { %1863 = vmatmul.mubr.msk.bf16.gmra.mrb[36].mxu1 %vm640_vm1, %v2140_v24 }
 0x194   :  { %1875 = vmatpush3.bf16.msra.mxu1 %v2139_v32  ;;  %1882 = vmatprep.mubr.msk.bf16.mxu1 %vm2311_vm0, %v2310_v0  ;;  %v757_v40 = vmax.f32 %v724_v37, 0.0 }
 0x195   :  { %1876 = vmatprep.subr.bf16.mxu1 %v2310_v0 }
 0x196   :  { %v783_v41 = vpack.c.bf16 %v757_v40, %v756_v36  ;;  %v2002_v40 = vadd.f32 %v2551_v44, %v385_v60  ;;  %v2011_v60 = vadd.f32 %v2551_v44, %v388_v9 }
 0x198   :  { %1877 = vmatpush3.bf16.msra.mxu1 %v2141_v39  ;;  %v2012_v5 = vadd.f32 %v2011_v60, %v2554_v48 }
 0x199   :  { %1878 = vmatprep.subr.bf16.mxu1 %v2310_v0 }
 0x19c   :  { %1879 = vmatpush3.bf16.msra.mxu1 %v2142_v43 }
 0x19d   :  { %1880 = vmatprep.subr.bf16.mxu1 %v2310_v0 }
 0x1a0   :  { %1881 = vmatpush3.bf16.msra.mxu1 %v2143_v45 }
 0x1a1   :  { %1954 = vmatprep.subr.bf16.mxu1 %v2310_v0 }
 0x1a3   :  { %1883 = vmatmul.mubr.bf16.vlgmr.msra.gmra.mrb[0].mxu1 %v780_v42  ;;  %v2145_v42 = vld [vmem:[#allocation7 + $0x88] sm:$0xff]  }
 0x1a4   :  { %1886 = vmatprep.mubr.msk.bf16.mxu1 %vm2311_vm0, %v2310_v0  ;;  %1913 = vmatpush3.bf16.msra.mxu0 %v2145_v42 }
 0x1a5   :  { %1914 = vmatprep.subr.bf16.mxu0 %v2310_v0 }
 0x1a8   :  { %1915 = vmatpush3.bf16.msra.mxu0 %v2146_v50 }
 0x1a9   :  { %1916 = vmatprep.subr.bf16.mxu0 %v2310_v0 }
 0x1ab   :  { %1887 = vmatmul.mubr.bf16.gmra.mrb[4].mxu1 %v781_v1 }
 0x1ac   :  { %1890 = vmatprep.mubr.msk.bf16.mxu1 %vm2311_vm0, %v2310_v0  ;;  %1917 = vmatpush3.bf16.msra.mxu0 %v2147_v51 }
 0x1ad   :  { %1918 = vmatprep.subr.bf16.mxu0 %v2310_v0 }
 0x1b0   :  { %1919 = vmatpush3.bf16.msra.mxu0 %v2148_v53 }
 0x1b1   :  { %1920 = vmatprep.subr.bf16.mxu0 %v2310_v0 }
 0x1b3   :  { %1891 = vmatmul.mubr.bf16.gmra.mrb[8].mxu1 %v782_v23 }
 0x1b4   :  { %1894 = vmatprep.mubr.msk.bf16.mxu1 %vm2311_vm0, %v2310_v0  ;;  %1921 = vmatpush3.bf16.msra.mxu0 %v2149_v54 }
 0x1b5   :  { %1922 = vmatprep.subr.bf16.mxu0 %v2310_v0 }
 0x1b8   :  { %1923 = vmatpush3.bf16.msra.mxu0 %v2150_v55 }
 0x1b9   :  { %1924 = vmatprep.subr.bf16.mxu0 %v2310_v0 }
 0x1bb   :  { %1895 = vmatmul.mubr.bf16.gmra.mrb[12].mxu1 %v783_v41  ;;  %v2003_v41 = vadd.f32 %v2002_v40, %v2554_v48 }
 0x1bc   :  { %1898 = vmatprep.mubr.msk.bf16.mxu1 %vm2311_vm0, %v2310_v0  ;;  %1925 = vmatpush3.bf16.msra.mxu0 %v2151_v58 }
 0x256   :  { %v728_v62 = vpop.f32.mrb[28].mxu1 }
 0x257   :  { %v729_v63 = vadd.f32 %v728_v62, %v2581_v26  ;;  %v1856_v1 = vpop.f32.mrb[29].mxu1 }
 0x258   :  { %v731_v3 = vpop.f32.mrb[30].mxu1  ;;  %v2017_v1 = vadd.f32 %v2551_v44, %v390_v20 }
 0x259   :  { %v732_v4 = vadd.f32 %v731_v3, %v2581_v26  ;;  %v1857_v6 = vpop.f32.mrb[31].mxu1  ;;  %v758_v10 = vmax.f32 %v729_v63, 0.0  ;;  %v2015_v3 = vadd.f32 %v2014_v7, %v2554_v48 }
 0x25a   :  { %v2018_v16 = vadd.f32 %v2017_v1, %v2554_v48 }
 0x25b   :  { %v759_v11 = vmax.f32 %v732_v4, 0.0 }
 0x25d   :  { %v784_v12 = vpack.c.bf16 %v759_v11, %v758_v10 }
 0x25e   :  { %v736_v13 = vpop.f32.mrb[32].mxu1 }
 0x25f   :  { %v737_v14 = vadd.f32 %v736_v13, %v2581_v26  ;;  %v1860_v15 = vpop.f32.mrb[33].mxu1  ;;  %1899 = vmatmul.mubr.bf16.gmra.mrb[16].mxu1 %v784_v12  ;;  %v2023_v13 = vadd.f32 %v2551_v44, %v392_v31  ;;  %v2152_v31 = vld [vmem:[#allocation7 + $0xc0] sm:$0xff]  }
 0x260   :  { %v739_v17 = vpop.f32.mrb[34].mxu1  ;;  %1902 = vmatprep.mubr.msk.bf16.mxu1 %vm2311_vm0, %v2310_v0  ;;  %1955 = vmatpush3.bf16.msra.mxu1 %v2152_v31 }
 0x261   :  { %v740_v22 = vadd.f32 %v739_v17, %v2581_v26  ;;  %v1861_v23 = vpop.f32.mrb[35].mxu1  ;;  %v760_v24 = vmax.f32 %v737_v14, 0.0  ;;  %v2021_v14 = vadd.f32 %v2020_v18, %v2554_v48  ;;  %v2024_v27 = vadd.f32 %v2023_v13, %v2554_v48  ;;  %1956 = vmatprep.subr.bf16.mxu1 %v2310_v0 }
 0x263   :  { %v761_v28 = vmax.f32 %v740_v22, 0.0 }
 0x265   :  { %v785_v32 = vpack.c.bf16 %v761_v28, %v760_v24  ;;  %v2155_v28 = vld [vmem:[#allocation7 + $0xd8] sm:$0xff]  }
 0x266   :  { %v744_v33 = vpop.f32.mrb[36].mxu1 }
 0x267   :  { %1903 = vmatmul.mubr.bf16.gmra.mrb[20].mxu1 %v785_v32  ;;  %v745_v34 = vadd.f32 %v744_v33, %v2581_v26  ;;  %v1864_v35 = vpop.f32.mrb[37].mxu1  ;;  %v2005_v26 = vadd.f32 %v2551_v44, %v386_v61  ;;  %v2009_v61 = vadd.f32 %v2008_v57, %v2554_v48  ;;  %v2153_v44 = vld [vmem:[#allocation7 + $0xc8] sm:$0xff]   ;;  %v2156_v32 = vld [vmem:[#allocation7 + $0xe0] sm:$0xff]  }
 0x268   :  { %v747_v36 = vpop.f32.mrb[38].mxu1  ;;  %1906 = vmatprep.mubr.msk.bf16.mxu1 %vm2311_vm0, %v2310_v0  ;;  %1957 = vmatpush3.bf16.msra.mxu1 %v2153_v44  ;;  %v2157_v33 = vld [vmem:[#allocation7 + $0xe8] sm:$0xff]   ;;  %v2159_v35 = vld [vmem:[#allocation7 + $0xf8] sm:$0xff]  }
 0x269   :  { %v762_v37 = vmax.f32 %v745_v34, 0.0  ;;  %v1865_v38 = vpop.f32.mrb[39].mxu1  ;;  %v2006_v42 = vadd.f32 %v2005_v26, %v2554_v48  ;;  %1958 = vmatprep.subr.bf16.mxu1 %v2310_v0  ;;  %v2154_v48 = vld [vmem:[#allocation7 + $0xd0] sm:$0xff]  }
 0x26a   :  { %v2158_v34 = vld [vmem:[#allocation7 + $0xf0] sm:$0xff]  }
 0x26b   :  { %v786_v39 = vpack.c.bf16 %v762_v37, %v762_v37 }
 0x26c   :  { %1959 = vmatpush3.bf16.msra.mxu1 %v2154_v48 }
 0x26d   :  { %1960 = vmatprep.subr.bf16.mxu1 %v2310_v0 }
 0x26f   :  { %1907 = vmatmul.mubr.bf16.gmra.mrb[24].mxu1 %v786_v39 }
 0x270   :  { %1970 = vmatprep.mubr.msk.bf16.mxu1 %vm2311_vm0, %v2310_v0  ;;  %1961 = vmatpush3.bf16.msra.mxu1 %v2155_v28 }
 0x271   :  { %1962 = vmatprep.subr.bf16.mxu1 %v2310_v0 }
 0x274   :  { %1963 = vmatpush3.bf16.msra.mxu1 %v2156_v32 }
 0x275   :  { %1964 = vmatprep.subr.bf16.mxu1 %v2310_v0 }
 0x276   :  { %v873_v43 = vpop.f32.mrb[0].mxu1 }
 0x277   :  { %v2656_v45 = vadd.f32 %v2003_v41, %v873_v43  ;;  %v1884_v46 = vpop.f32.mrb[1].mxu1 }
 0x278   :  { %v876_v50 = vpop.f32.mrb[2].mxu1  ;;  %1965 = vmatpush3.bf16.msra.mxu1 %v2157_v33 }
 0x279   :  { %v2659_v51 = vadd.f32 %v2006_v42, %v876_v50  ;;  %v1885_v53 = vpop.f32.mrb[3].mxu1  ;;  %1966 = vmatprep.subr.bf16.mxu1 %v2310_v0 }
 0x27b   :  { %v957_v59 = vpack.c.bf16 %v2659_v51, %v2656_v45 }
 0x27c   :  { %1967 = vmatpush3.bf16.msra.mxu1 %v2158_v34 }
 0x27d   :  { %1927 = vmatmul.mubr.bf16.vlgmr.msra.gmra.mrb[44].mxu0 %v957_v59  ;;  %1968 = vmatprep.subr.bf16.mxu1 %v2310_v0 }
 0x27e   :  { %v881_v54 = vpop.f32.mrb[4].mxu1  ;;  %1930 = vmatprep.mubr.msk.bf16.mxu0 %vm2311_vm0, %v2310_v0 }
 0x27f   :  { %v2672_v55 = vadd.f32 %v2009_v61, %v881_v54  ;;  %v1888_v58 = vpop.f32.mrb[5].mxu1 }
 0x280   :  { %v884_v8 = vpop.f32.mrb[6].mxu1  ;;  %1969 = vmatpush3.bf16.msra.mxu1 %v2159_v35 }
 0x281   :  { %v2675_v62 = vadd.f32 %v2012_v5, %v884_v8  ;;  %v1889_v63 = vpop.f32.mrb[7].mxu1 }
 0x283   :  { %v958_v9 = vpack.c.bf16 %v2675_v62, %v2672_v55 }
 0x285   :  { %1931 = vmatmul.mubr.bf16.gmra.mrb[48].mxu0 %v958_v9 }
 0x286   :  { %v889_v4 = vpop.f32.mrb[8].mxu1  ;;  %1934 = vmatprep.mubr.msk.bf16.mxu0 %vm2311_vm0, %v2310_v0 }
 0x287   :  { %v2688_v6 = vadd.f32 %v2015_v3, %v889_v4  ;;  %v1892_v10 = vpop.f32.mrb[9].mxu1 }
 0x288   :  { %v892_v19 = vpop.f32.mrb[10].mxu1 }
 0x289   :  { %v2691_v11 = vadd.f32 %v2018_v16, %v892_v19  ;;  %v1893_v12 = vpop.f32.mrb[11].mxu1 }
 0x28b   :  { %v959_v20 = vpack.c.bf16 %v2691_v11, %v2688_v6 }
 0x28d   :  { %1935 = vmatmul.mubr.bf16.gmra.mrb[52].mxu0 %v959_v20 }
 0x28e   :  { %v897_v15 = vpop.f32.mrb[12].mxu1  ;;  %1938 = vmatprep.mubr.msk.bf16.mxu0 %vm2311_vm0, %v2310_v0 }
 0x28f   :  { %v2704_v17 = vadd.f32 %v2021_v14, %v897_v15  ;;  %v1896_v22 = vpop.f32.mrb[13].mxu1 }
 0x290   :  { %v900_v30 = vpop.f32.mrb[14].mxu1 }
 0x291   :  { %v2707_v23 = vadd.f32 %v2024_v27, %v900_v30  ;;  %v1897_v24 = vpop.f32.mrb[15].mxu1 }
 0x293   :  { %v960_v29 = vpack.c.bf16 %v2707_v23, %v2704_v17 }
 0x295   :  { %1939 = vmatmul.mubr.bf16.gmra.mrb[56].mxu0 %v960_v29 }
 0x296   :  { %1942 = vmatprep.mubr.msk.bf16.mxu0 %vm2311_vm0, %v2310_v0 }
 0x332   :  { %v905_v36 = vpop.f32.mrb[16].mxu1 }
 0x333   :  { %v2721_v37 = vadd.f32 %v2558_v56, %v905_v36  ;;  %v1900_v38 = vpop.f32.mrb[17].mxu1 }
 0x334   :  { %v908_v39 = vpop.f32.mrb[18].mxu1 }
 0x335   :  { %v2724_v40 = vadd.f32 %v2563_v2, %v908_v39  ;;  %v1901_v26 = vpop.f32.mrb[19].mxu1 }
 0x337   :  { %v961_v41 = vpack.c.bf16 %v2724_v40, %v2721_v37 }
 0x339   :  { %1943 = vmatmul.mubr.bf16.gmra.mrb[60].mxu0 %v961_v41 }
 0x33a   :  { %v913_v43 = vpop.f32.mrb[20].mxu1  ;;  %1946 = vmatprep.mubr.msk.bf16.mxu0 %vm2311_vm0, %v2310_v0 }
 0x33b   :  { %v2731_v46 = vadd.f32 %v2571_v21, %v913_v43  ;;  %v1904_v42 = vpop.f32.mrb[21].mxu1 }
 0x33c   :  { %v916_v56 = vpop.f32.mrb[22].mxu1  ;;  %v2162_v42 = vld [vmem:[#allocation8 + $0x4] ss:$8 sps:$4 sm:$0xff]  }
 0x33d   :  { %v2734_v50 = vadd.f32 %v2576_v25, %v916_v56  ;;  %v1905_v53 = vpop.f32.mrb[23].mxu1  ;;  %v966_v25 = vsub.s32 4, %v2475_v47  ;;  %v2160_v56 = vld [vmem:[#allocation8] ss:$8 sps:$4 sm:$0xff]   ;;  %1423 = vmatprep.subr.bf16.mxu0 %v2162_v42 }
 0x33e   :  { %1424 = vmatpush1.bf16.msra.mxu0 %v2160_v56  ;;  %v2165_v53 = vld [vmem:[#allocation8 + $0x14] ss:$8 sps:$4 sm:$0xff]  }
 0x33f   :  { %v962_v2 = vpack.c.bf16 %v2734_v50, %v2731_v46  ;;  %v2747_v58 = vrot.slane %v2480_v49, %v966_v25  ;;  %1425 = vmatprep.subr.bf16.mxu0 %v2165_v53  ;;  %v2177_v25 = vld [vmem:[#allocation8 + $0x54] ss:$8 sps:$4 sm:$0xff]  }
 0x341   :  { %1947 = vmatmul.mubr.bf16.gmra.mrb[64].mxu0 %v962_v2  ;;  %v2168_v2 = vld [vmem:[#allocation8 + $0x24] ss:$8 sps:$4 sm:$0xff]  }
 0x342   :  { %v921_v57 = vpop.f32.mrb[24].mxu1  ;;  %1950 = vmatprep.mubr.msk.bf16.mxu0 %vm2311_vm0, %v2310_v0 }
 0x343   :  { %v2741_v59 = vadd.f32 %v2586_v52, %v921_v57  ;;  %v1908_v60 = vpop.f32.mrb[25].mxu1  ;;  %v2166_v57 = vld [vmem:[#allocation8 + $0x20] ss:$8 sps:$4 sm:$0xff]  }
 0x344   :  { %v924_v21 = vpop.f32.mrb[26].mxu1  ;;  %v2171_v60 = vld [vmem:[#allocation8 + $0x34] ss:$8 sps:$4 sm:$0xff]  }
 0x345   :  { %v1909_v61 = vpop.f32.mrb[27].mxu1  ;;  %v963_v54 = vpack.c.bf16 %v2741_v59, %v2741_v59  ;;  %v2169_v21 = vld [vmem:[#allocation8 + $0x30] ss:$8 sps:$4 sm:$0xff]  }
 0x346   :  { %v2172_v61 = vld [vmem:[#allocation8 + $0x40] ss:$8 sps:$4 sm:$0xff]  }
 0x349   :  { %1951 = vmatmul.mubr.bf16.gmra.mrb[68].mxu0 %v963_v54  ;;  %v2174_v54 = vld [vmem:[#allocation8 + $0x44] ss:$8 sps:$4 sm:$0xff]  }
 0x350   :  { %v1050_v5 = vpop.f32.mrb[44].mxu0 }
 0x351   :  { %v1051_v8 = vadd.f32 %v1050_v5, %v2747_v58  ;;  %v1928_v63 = vpop.f32.mrb[45].mxu0  ;;  %v2175_v5 = vld [vmem:[#allocation8 + $0x50] ss:$8 sps:$4 sm:$0xff]  }
 0x352   :  { %v1053_v7 = vpop.f32.mrb[46].mxu0  ;;  %v2178_v63 = vld [vmem:[#allocation8 + $0x60] ss:$8 sps:$4 sm:$0xff]  }
 0x353   :  { %v2751_v52 = vadd.f32 %v2656_v45, %v1051_v8  ;;  %v1054_v9 = vadd.f32 %v1053_v7, %v2747_v58  ;;  %v1929_v1 = vpop.f32.mrb[47].mxu0  ;;  %v2180_v8 = vld [vmem:[#allocation8 + $0x64] ss:$8 sps:$4 sm:$0xff]   ;;  %v2183_v7 = vld [vmem:[#allocation8 + $0x74] ss:$8 sps:$4 sm:$0xff]  }
 0x354   :  { %v2312_v1 = vmov 0  }
 0x355   :  { %v2755_v3 = vadd.f32 %v2659_v51, %v1054_v9  ;;  %v1117_v4 = vmax.f32 %v2751_v52, 0.0  ;;  %v2181_v9 = vld [vmem:[#allocation8 + $0x70] ss:$8 sps:$4 sm:$0xff]   ;;  %1455 = vmatprep.mubr.bf16.mxu0 %v2312_v1 }
 0x357   :  { %v1118_v10 = vmax.f32 %v2755_v3, 0.0 }
 0x358   :  { %v1058_v16 = vpop.f32.mrb[48].mxu0 }
 0x359   :  { %v1147_v19 = vpack.c.bf16 %v1118_v10, %v1117_v4  ;;  %v1059_v12 = vadd.f32 %v1058_v16, %v2747_v58  ;;  %v1932_v45 = vpop.f32.mrb[49].mxu0 }
 0x35a   :  { %v1061_v18 = vpop.f32.mrb[50].mxu0 }
 0x35b   :  { %v2765_v20 = vadd.f32 %v2672_v55, %v1059_v12  ;;  %v1062_v51 = vadd.f32 %v1061_v18, %v2747_v58  ;;  %v1933_v13 = vpop.f32.mrb[51].mxu0  ;;  %1971 = vmatmul.mubr.bf16.vlgmr.msra.gmra.mrb[40].mxu1 %v1147_v19 }
 0x35c   :  { %1974 = vmatprep.mubr.msk.bf16.mxu1 %vm2311_vm0, %v2310_v0 }
 0x35d   :  { %v2771_v14 = vadd.f32 %v2675_v62, %v1062_v51  ;;  %v1119_v15 = vmax.f32 %v2765_v20, 0.0 }
 0x35f   :  { %v1120_v22 = vmax.f32 %v2771_v14, 0.0 }
 0x360   :  { %v1066_v27 = vpop.f32.mrb[52].mxu0 }
 0x361   :  { %v1067_v30 = vadd.f32 %v1066_v27, %v2747_v58  ;;  %v1936_v24 = vpop.f32.mrb[53].mxu0  ;;  %v1148_v55 = vpack.c.bf16 %v1120_v22, %v1119_v15 }
 0x362   :  { %v1069_v29 = vpop.f32.mrb[54].mxu0 }
 0x363   :  { %v2781_v31 = vadd.f32 %v2688_v6, %v1067_v30  ;;  %v1070_v62 = vadd.f32 %v1069_v29, %v2747_v58  ;;  %v1937_v44 = vpop.f32.mrb[55].mxu0  ;;  %1975 = vmatmul.mubr.bf16.gmra.mrb[44].mxu1 %v1148_v55 }
 0x364   :  { %1978 = vmatprep.mubr.msk.bf16.mxu1 %vm2311_vm0, %v2310_v0 }
 0x365   :  { %v2787_v48 = vadd.f32 %v2691_v11, %v1070_v62  ;;  %v1121_v28 = vmax.f32 %v2781_v31, 0.0 }
 0x367   :  { %v1122_v32 = vmax.f32 %v2787_v48, 0.0 }
 0x368   :  { %v1074_v33 = vpop.f32.mrb[56].mxu0 }
 0x369   :  { %v1075_v34 = vadd.f32 %v1074_v33, %v2747_v58  ;;  %v1940_v35 = vpop.f32.mrb[57].mxu0  ;;  %v1149_v6 = vpack.c.bf16 %v1122_v32, %v1121_v28 }
 0x36a   :  { %v1077_v36 = vpop.f32.mrb[58].mxu0 }
 0x36b   :  { %v2797_v38 = vadd.f32 %v2704_v17, %v1075_v34  ;;  %v1078_v11 = vadd.f32 %v1077_v36, %v2747_v58  ;;  %v1941_v39 = vpop.f32.mrb[59].mxu0  ;;  %1979 = vmatmul.mubr.bf16.gmra.mrb[48].mxu1 %v1149_v6 }
 0x36c   :  { %1982 = vmatprep.mubr.msk.bf16.mxu1 %vm2311_vm0, %v2310_v0 }
 0x36d   :  { %v2803_v26 = vadd.f32 %v2707_v23, %v1078_v11  ;;  %v1123_v41 = vmax.f32 %v2797_v38, 0.0  ;;  %v2163_v23 = vld [vmem:[#allocation8 + $0x10] ss:$8 sps:$4 sm:$0xff]  }
 0x36e   :  { %1426 = vmatpush1.bf16.msra.mxu0 %v2163_v23 }
 0x36f   :  { %v1124_v43 = vmax.f32 %v2803_v26, 0.0  ;;  %1427 = vmatprep.subr.bf16.mxu0 %v2168_v2 }
 0x371   :  { %v1150_v17 = vpack.c.bf16 %v1124_v43, %v1123_v41 }
 0x372   :  { %1428 = vmatpush1.bf16.msra.mxu0 %v2166_v57 }
 0x373   :  { %1983 = vmatmul.mubr.bf16.gmra.mrb[52].mxu1 %v1150_v17  ;;  %1429 = vmatprep.subr.bf16.mxu0 %v2171_v60 }
 0x374   :  { %1986 = vmatprep.mubr.msk.bf16.mxu1 %vm2311_vm0, %v2310_v0 }
 0x376   :  { %1430 = vmatpush1.bf16.msra.mxu0 %v2169_v21 }
 0x377   :  { %1431 = vmatprep.subr.bf16.mxu0 %v2174_v54 }
 0x37a   :  { %1432 = vmatpush1.bf16.msra.mxu0 %v2172_v61 }
 0x37b   :  { %1433 = vmatprep.subr.bf16.mxu0 %v2177_v25 }
 0x37e   :  { %1434 = vmatpush1.bf16.msra.mxu0 %v2175_v5 }
 0x37f   :  { %1435 = vmatprep.subr.bf16.mxu0 %v2180_v8 }
 0x382   :  { %1436 = vmatpush1.bf16.msra.mxu0 %v2178_v63 }
 0x383   :  { %1437 = vmatprep.subr.bf16.mxu0 %v2183_v7 }
 0x386   :  { %1438 = vmatpush1.bf16.msra.mxu0 %v2181_v9 }
 0x40c   :  { %v1082_v16 = vpop.f32.mrb[60].mxu0 }
 0x40d   :  { %v1083_v19 = vadd.f32 %v1082_v16, %v2747_v58  ;;  %v1944_v12 = vpop.f32.mrb[61].mxu0 }
 0x40e   :  { %v1085_v45 = vpop.f32.mrb[62].mxu0 }
 0x40f   :  { %v2816_v18 = vadd.f32 %v2721_v37, %v1083_v19  ;;  %v1086_v51 = vadd.f32 %v1085_v45, %v2747_v58  ;;  %v1945_v13 = vpop.f32.mrb[63].mxu0 }
 0x411   :  { %v2820_v27 = vadd.f32 %v2724_v40, %v1086_v51  ;;  %v1125_v30 = vmax.f32 %v2816_v18, 0.0 }
 0x413   :  { %v1126_v24 = vmax.f32 %v2820_v27, 0.0 }
 0x414   :  { %v1090_v55 = vpop.f32.mrb[64].mxu0 }
 0x415   :  { %v1091_v29 = vadd.f32 %v1090_v55, %v2747_v58  ;;  %v1948_v62 = vpop.f32.mrb[65].mxu0  ;;  %v1151_v37 = vpack.c.bf16 %v1126_v24, %v1125_v30 }
 0x416   :  { %v1093_v44 = vpop.f32.mrb[66].mxu0 }
 0x417   :  { %v2830_v33 = vadd.f32 %v2731_v46, %v1091_v29  ;;  %v1094_v40 = vadd.f32 %v1093_v44, %v2747_v58  ;;  %v1949_v34 = vpop.f32.mrb[67].mxu0  ;;  %1987 = vmatmul.mubr.bf16.gmra.mrb[56].mxu1 %v1151_v37 }
 0x418   :  { %1990 = vmatprep.mubr.msk.bf16.mxu1 %vm2311_vm0, %v2310_v0 }
 0x419   :  { %v2836_v35 = vadd.f32 %v2734_v50, %v1094_v40  ;;  %v1127_v6 = vmax.f32 %v2830_v33, 0.0 }
 0x41b   :  { %v1128_v36 = vmax.f32 %v2836_v35, 0.0 }
 0x41c   :  { %v1098_v11 = vpop.f32.mrb[68].mxu0 }
 0x41d   :  { %v1099_v39 = vadd.f32 %v1098_v11, %v2747_v58  ;;  %v1952_v17 = vpop.f32.mrb[69].mxu0  ;;  %v1152_v46 = vpack.c.bf16 %v1128_v36, %v1127_v6  ;;  %v1156_v58 = vsub.s32 5, %v2475_v47 }
 0x41e   :  { %v1101_v42 = vpop.f32.mrb[70].mxu0 }
 0x41f   :  { %v1116_v56 = vadd.f32 %v2741_v59, %v1099_v39  ;;  %v1953_v53 = vpop.f32.mrb[71].mxu0  ;;  %1991 = vmatmul.mubr.bf16.gmra.mrb[60].mxu1 %v1152_v46  ;;  %v2854_v2 = vrot.slane %v2480_v49, %v1156_v58 }
 0x420   :  { %1994 = vmatprep.mubr.msk.bf16.mxu1 %vm2311_vm0, %v2310_v0 }
 0x421   :  { %v2848_v50 = vmax.f32 %v1116_v56, 0.0 }
 0x423   :  { %v1153_v23 = vpack.c.bf16 %v2848_v50, %v2848_v50 }
 0x427   :  { %1995 = vmatmul.mubr.bf16.gmra.mrb[64].mxu1 %v1153_v23 }
 0x42e   :  { %v1240_v57 = vpop.f32.mrb[40].mxu1 }
 0x42f   :  { %v1241_v60 = vadd.f32 %v1240_v57, %v2854_v2  ;;  %v1972_v59 = vpop.f32.mrb[41].mxu1 }
 0x430   :  { %v1243_v21 = vpop.f32.mrb[42].mxu1 }
 0x431   :  { %v1294_v61 = vadd.f32 %v1241_v60, %v1117_v4  ;;  %v1244_v0 = vadd.f32 %v1243_v21, %v2854_v2  ;;  %v1973_v54 = vpop.f32.mrb[43].mxu1 }
 0x433   :  { %v1295_v25 = vadd.f32 %v1244_v0, %v1118_v10  ;;  %v1307_v5 = vmax.f32 %v1294_v61, 0.0 }
 0x435   :  { %v1308_v8 = vmax.f32 %v1295_v25, 0.0 }
 0x436   :  { %v1248_v47 = vpop.f32.mrb[44].mxu1 }
 0x437   :  { %v1336_v63 = vpack.c.bf16 %v1308_v8, %v1307_v5  ;;  %v1249_v49 = vadd.f32 %v1248_v47, %v2854_v2  ;;  %v1976_v7 = vpop.f32.mrb[45].mxu1 }
 0x438   :  { %v1251_v9 = vpop.f32.mrb[46].mxu1 }
 0x439   :  { %v1296_v16 = vadd.f32 %v1249_v49, %v1119_v15  ;;  %v1252_v52 = vadd.f32 %v1251_v9, %v2854_v2  ;;  %v1977_v4 = vpop.f32.mrb[47].mxu1  ;;  %1456 = vmatmul.mubr.bf16.vlgmr.msra.gmra.mrb[72].mxu0 %v1336_v63 }
 0x43a   :  { %1465 = vmatprep.mubr.bf16.mxu0 %v2312_v1 }
 0x43b   :  { %v1297_v3 = vadd.f32 %v1252_v52, %v1120_v22  ;;  %v1309_v10 = vmax.f32 %v1296_v16, 0.0 }
 0x43d   :  { %v1310_v19 = vmax.f32 %v1297_v3, 0.0 }
 0x43e   :  { %v1256_v12 = vpop.f32.mrb[48].mxu1 }
 0x43f   :  { %v1257_v45 = vadd.f32 %v1256_v12, %v2854_v2  ;;  %v1980_v51 = vpop.f32.mrb[49].mxu1  ;;  %v1337_v13 = vpack.c.bf16 %v1310_v19, %v1309_v10 }
 0x440   :  { %v1259_v55 = vpop.f32.mrb[50].mxu1 }
 0x441   :  { %v1298_v20 = vadd.f32 %v1257_v45, %v1121_v28  ;;  %v1260_v15 = vadd.f32 %v1259_v55, %v2854_v2  ;;  %v1981_v29 = vpop.f32.mrb[51].mxu1  ;;  %1466 = vmatmul.mubr.bf16.gmra.mrb[76].mxu0 %v1337_v13 }
 0x442   :  { %1475 = vmatprep.mubr.bf16.mxu0 %v2312_v1 }
 0x443   :  { %v1299_v14 = vadd.f32 %v1260_v15, %v1122_v32  ;;  %v1311_v22 = vmax.f32 %v1298_v20, 0.0 }
 0x445   :  { %v1312_v62 = vmax.f32 %v1299_v14, 0.0 }
 0x446   :  { %v1264_v37 = vpop.f32.mrb[52].mxu1 }
 0x447   :  { %v1265_v44 = vadd.f32 %v1264_v37, %v2854_v2  ;;  %v1984_v40 = vpop.f32.mrb[53].mxu1  ;;  %v1338_v34 = vpack.c.bf16 %v1312_v62, %v1311_v22 }
 0x448   :  { %v1267_v11 = vpop.f32.mrb[54].mxu1 }
 0x449   :  { %v1300_v31 = vadd.f32 %v1265_v44, %v1123_v41  ;;  %v1268_v28 = vadd.f32 %v1267_v11, %v2854_v2  ;;  %v1985_v39 = vpop.f32.mrb[55].mxu1  ;;  %1476 = vmatmul.mubr.bf16.gmra.mrb[80].mxu0 %v1338_v34 }
 0x44a   :  { %1485 = vmatprep.mubr.bf16.mxu0 %v2312_v1 }
 0x44b   :  { %v1301_v48 = vadd.f32 %v1268_v28, %v1124_v43  ;;  %v1313_v32 = vmax.f32 %v1300_v31, 0.0 }
 0x44d   :  { %v1314_v17 = vmax.f32 %v1301_v48, 0.0 }
 0x44f   :  { %v1339_v46 = vpack.c.bf16 %v1314_v17, %v1313_v32 }
 0x451   :  { %1486 = vmatmul.mubr.bf16.gmra.mrb[84].mxu0 %v1339_v46 }
 0x452   :  { %1495 = vmatprep.mubr.bf16.mxu0 %v2312_v1 }
 0x4ea   :  { %v1272_v42 = vpop.f32.mrb[56].mxu1 }
 0x4eb   :  { %v1273_v56 = vadd.f32 %v1272_v42, %v2854_v2  ;;  %v1988_v38 = vpop.f32.mrb[57].mxu1 }
 0x4ec   :  { %v1275_v41 = vpop.f32.mrb[58].mxu1 }
 0x4ed   :  { %v1302_v53 = vadd.f32 %v1273_v56, %v1125_v30  ;;  %v1276_v23 = vadd.f32 %v1275_v41, %v2854_v2  ;;  %v1989_v58 = vpop.f32.mrb[59].mxu1 }
 0x4ef   :  { %v1303_v26 = vadd.f32 %v1276_v23, %v1126_v24  ;;  %v1315_v43 = vmax.f32 %v1302_v53, 0.0 }
 0x4f1   :  { %v1316_v57 = vmax.f32 %v1303_v26, 0.0 }
 0x4f2   :  { %v1280_v60 = vpop.f32.mrb[60].mxu1 }
 0x4f3   :  { %v1281_v59 = vadd.f32 %v1280_v60, %v2854_v2  ;;  %v1992_v21 = vpop.f32.mrb[61].mxu1  ;;  %v1340_v61 = vpack.c.bf16 %v1316_v57, %v1315_v43 }
 0x4f4   :  { %v1283_v0 = vpop.f32.mrb[62].mxu1 }
 0x4f5   :  { %v1304_v54 = vadd.f32 %v1281_v59, %v1127_v6  ;;  %v1284_v18 = vadd.f32 %v1283_v0, %v2854_v2  ;;  %v1993_v30 = vpop.f32.mrb[63].mxu1  ;;  %1496 = vmatmul.mubr.bf16.gmra.mrb[88].mxu0 %v1340_v61 }
 0x4f6   :  { %1505 = vmatprep.mubr.bf16.mxu0 %v2312_v1 }
 0x4f7   :  { %v1305_v27 = vadd.f32 %v1284_v18, %v1128_v36  ;;  %v1317_v24 = vmax.f32 %v1304_v54, 0.0 }
 0x4f9   :  { %v1318_v25 = vmax.f32 %v1305_v27, 0.0 }
 0x4fa   :  { %v1288_v5 = vpop.f32.mrb[64].mxu1 }
 0x4fb   :  { %v1289_v8 = vadd.f32 %v1288_v5, %v2854_v2  ;;  %v1996_v47 = vpop.f32.mrb[65].mxu1  ;;  %v1341_v63 = vpack.c.bf16 %v1318_v25, %v1317_v24 }
 0x4fc   :  { %v1291_v49 = vpop.f32.mrb[66].mxu1 }
 0x4fd   :  { %v1306_v33 = vadd.f32 %v1289_v8, %v2848_v50  ;;  %v1997_v6 = vpop.f32.mrb[67].mxu1  ;;  %1506 = vmatmul.mubr.bf16.gmra.mrb[92].mxu0 %v1341_v63 }
 0x4fe   :  { %1515 = vmatprep.mubr.bf16.mxu0 %v2312_v1 }
 0x4ff   :  { %v1319_v7 = vmax.f32 %v1306_v33, 0.0 }
 0x501   :  { %v1342_v9 = vpack.c.bf16 %v1319_v7, %v1319_v7 }
 0x505   :  { %1516 = vmatmul.mubr.bf16.gmra.mrb[96].mxu0 %v1342_v9 }
 0x50c   :  { %v1457_v16 = vpop.f32.mrb[72].mxu0 }
 0x50d   :  { %1524 = vst [vmem:[#allocation10] sm:$0xff] %v1457_v16  ;;  %v1459_v35 = vpop.f32.mrb[73].mxu0 }
 0x50e   :  { %1525 = vst [vmem:[#allocation10 + $0x8] sm:$0xff] %v1459_v35  ;;  %v1461_v36 = vpop.f32.mrb[74].mxu0 }
 0x50f   :  { %1526 = vst [vmem:[#allocation10 + $0x10] sm:$0xff] %v1461_v36  ;;  %v1463_v52 = vpop.f32.mrb[75].mxu0 }
 0x510   :  { %1527 = vst [vmem:[#allocation10 + $0x18] sm:$0xff] %v1463_v52 }
 0x514   :  { %v1467_v2 = vpop.f32.mrb[76].mxu0 }
 0x515   :  { %1528 = vst [vmem:[#allocation10 + $0x20] sm:$0xff] %v1467_v2  ;;  %v1469_v4 = vpop.f32.mrb[77].mxu0 }
 0x516   :  { %1529 = vst [vmem:[#allocation10 + $0x28] sm:$0xff] %v1469_v4  ;;  %v1471_v50 = vpop.f32.mrb[78].mxu0 }
 0x517   :  { %1530 = vst [vmem:[#allocation10 + $0x30] sm:$0xff] %v1471_v50  ;;  %v1473_v3 = vpop.f32.mrb[79].mxu0 }
 0x518   :  { %1531 = vst [vmem:[#allocation10 + $0x38] sm:$0xff] %v1473_v3 }
 0x51c   :  { %v1477_v1 = vpop.f32.mrb[80].mxu0 }
 0x51d   :  { %1532 = vst [vmem:[#allocation10 + $0x40] sm:$0xff] %v1477_v1  ;;  %v1479_v10 = vpop.f32.mrb[81].mxu0 }
 0x51e   :  { %1533 = vst [vmem:[#allocation10 + $0x48] sm:$0xff] %v1479_v10  ;;  %v1481_v19 = vpop.f32.mrb[82].mxu0 }
 0x51f   :  { %1534 = vst [vmem:[#allocation10 + $0x50] sm:$0xff] %v1481_v19  ;;  %v1483_v12 = vpop.f32.mrb[83].mxu0 }
 0x520   :  { %1535 = vst [vmem:[#allocation10 + $0x58] sm:$0xff] %v1483_v12 }
 0x524   :  { %v1487_v45 = vpop.f32.mrb[84].mxu0 }
 0x525   :  { %1536 = vst [vmem:[#allocation10 + $0x60] sm:$0xff] %v1487_v45  ;;  %v1489_v51 = vpop.f32.mrb[85].mxu0 }
 0x526   :  { %1537 = vst [vmem:[#allocation10 + $0x68] sm:$0xff] %v1489_v51  ;;  %v1491_v13 = vpop.f32.mrb[86].mxu0 }
 0x527   :  { %1538 = vst [vmem:[#allocation10 + $0x70] sm:$0xff] %v1491_v13  ;;  %v1493_v55 = vpop.f32.mrb[87].mxu0 }
 0x528   :  { %1539 = vst [vmem:[#allocation10 + $0x78] sm:$0xff] %v1493_v55 }
 0x5c8   :  { %v1497_v20 = vpop.f32.mrb[88].mxu0 }
 0x5c9   :  { %1540 = vst [vmem:[#allocation10 + $0x80] sm:$0xff] %v1497_v20  ;;  %v1499_v15 = vpop.f32.mrb[89].mxu0 }
 0x5ca   :  { %1541 = vst [vmem:[#allocation10 + $0x88] sm:$0xff] %v1499_v15  ;;  %v1501_v29 = vpop.f32.mrb[90].mxu0 }
 0x5cb   :  { %1542 = vst [vmem:[#allocation10 + $0x90] sm:$0xff] %v1501_v29  ;;  %v1503_v14 = vpop.f32.mrb[91].mxu0 }
 0x5cc   :  { %1543 = vst [vmem:[#allocation10 + $0x98] sm:$0xff] %v1503_v14 }
 0x5d0   :  { %v1507_v22 = vpop.f32.mrb[92].mxu0 }
 0x5d1   :  { %1544 = vst [vmem:[#allocation10 + $0xa0] sm:$0xff] %v1507_v22  ;;  %v1509_v62 = vpop.f32.mrb[93].mxu0 }
 0x5d2   :  { %1545 = vst [vmem:[#allocation10 + $0xa8] sm:$0xff] %v1509_v62  ;;  %v1511_v37 = vpop.f32.mrb[94].mxu0 }
 0x5d3   :  { %1546 = vst [vmem:[#allocation10 + $0xb0] sm:$0xff] %v1511_v37  ;;  %v1513_v44 = vpop.f32.mrb[95].mxu0 }
 0x5d4   :  { %1547 = vst [vmem:[#allocation10 + $0xb8] sm:$0xff] %v1513_v44 }
 0x5d8   :  { %v1517_v40 = vpop.f32.mrb[96].mxu0 }
 0x5d9   :  { %1548 = vst [vmem:[#allocation10 + $0xc0] sm:$0xff] %v1517_v40  ;;  %v1519_v34 = vpop.f32.mrb[97].mxu0 }
 0x5da   :  { %1549 = vst [vmem:[#allocation10 + $0xc8] sm:$0xff] %v1519_v34  ;;  %v1521_v11 = vpop.f32.mrb[98].mxu0 }
 0x5db   :  { %v1522_v31 = vpop.f32.mrb[99].mxu0 }
 0x5dc   :  { %2283 = shalt.err (!%p2280_p8)
}
 0x5dd   :  { %s2284_s26 = scalar_lea.hbm %s2919_s7, 3328 }
 0x5de   :  { %p2285_p9 = scmp.ne.s32.totalorder %s2919_s7, %s2284_s26  ;;  %p2288_p10 = scmp.lt.u32.totalorder %s2284_s26, %s2919_s7 }
 0x5e0   :  { %p2290_p11 = pnand %p2288_p10, %p2285_p9 }
 0x5e2   :  { %2293 = shalt.err (!%p2290_p11)
}
 0x5e3   :  { %s2314_s6 = smov 256   ;;  %s2315_s12 = smov 16  }
 0x5e4   :  { %1561 = dma.vmem_to_hbm [thread:$0]  %s1556_s21, 3328, %s2919_s7, [#allocation4], %s2314_s6, %s2314_s6, %s2315_s12  }
 0x5e5   :  { %2300 = dma.done.wait [#allocation4], 3328  }
 0x5e6   :  { %2301 = vsyncadd [#allocation4], 4294963968 }
 0x5e7   :  { %1565 = vsyncpa [#allocation3], 1 }
 0x5e8   :  { %1566 = vsyncpa [#allocation6], 1 }
 0x5e9   :  { %1567 = vsyncpa [#allocation9], 1 }
 0x5ea   :  { %1568 = vsyncpa [#allocation4], 1 }

</bundles_post_ra>
